<compile_context>
chip_gen: v7x
topology: tpu7x:2x2x1
jax: 0.10.0
libtpu: 0.0.40
codegen_flags: <defaults>
</compile_context>

<pallas_src>
import functools

import jax
import jax.numpy as jnp
from jax.experimental import pallas as pl
from jax.experimental.pallas import tpu as pltpu


def _vmem_limit_bytes():
    """Per-generation scoped-VMEM limit: ~3/4 of physical, capped at 100 MiB."""
    try:
        info = pltpu.get_tpu_info()
        for name in ("vmem_capacity_bytes", "vmem_size_bytes", "vmem_bytes"):
            cap = getattr(info, name, None)
            if cap:
                return min(int(cap) * 3 // 4, 100 * 1024 * 1024)
    except Exception:
        pass
    return 48 * 1024 * 1024  # conservative fallback: fits v7x's 64 MiB physical


def _pick_batch_tile(batch, channels, hw, in_itemsize, vmem_budget_bytes):
    """Largest divisor of `batch` (<= 8) whose per-step footprint fits the budget."""
    best = 1
    for tb in range(1, min(batch, 8) + 1):
        if batch % tb:
            continue
        per_image = channels * hw * (
            9 * in_itemsize      # shifted halo views
            + 9 * in_itemsize    # im2col patches (conservative: counted per image)
            + 2 * in_itemsize    # double-buffered input block
            + 2 * 4              # double-buffered f32 output block
            + 6 * 4)             # f32 temporaries (conv acc / sigmoid / products)
        if tb * per_image <= vmem_budget_bytes:
            best = tb
    return best


def shuffle_attn_kernel(x_ref, cw_ref, ws_ref, bs_ref, wft_ref, wfb_ref, bf_ref,
                        o_ref, *, H, W):
    """ShuffleAttention forward for TB images in CHW (lane = H*W) layout.

    x_ref:   (TB, C, HW)  activations, compute dtype (f32 or bf16)
    cw_ref:  (TB, 1, C)   per-image channel-attention weights, f32
    ws_ref:  (C, 9C)      3x3 conv weight, (out, offset-major / in-minor), compute dtype
    bs_ref:  (C, 1)       3x3 conv bias, f32
    wft_ref: (C, C)       final 1x1 weight, x_channel half (out, in), compute dtype
    wfb_ref: (C, C)       final 1x1 weight, x_spatial half (out, in), compute dtype
    bf_ref:  (C, 1)       final 1x1 bias, f32
    o_ref:   (TB, C, HW)  output
    """
    TB, C, HW = x_ref.shape
    cd = x_ref.dtype
    f32 = jnp.float32

    # (TB, C, HW) -> (TB*C, HW): each row is one (image, channel) plane with the
    # whole spatial extent in the lane dimension (lane-dense for any C).
    x2 = x_ref[...].reshape(TB * C, HW)

    # 3x3 'SAME' halo: shifted views via lane rolls.  Border masks depend only
    # on the lane (spatial) index, so build them once from a single (1, HW)
    # iota and reuse them for every view / image / channel row.
    pos = jax.lax.broadcasted_iota(jnp.int32, (1, HW), 1)          # h*W + w
    colp = pos % W
    row_ok = {-1: pos >= W, 0: None, 1: pos < (H - 1) * W}
    col_ok = {-1: colp >= 1, 0: None, 1: colp <= W - 2}

    def shifted(dy, dx):
        off = dy * W + dx
        v = x2 if off == 0 else pltpu.roll(x2, shift=(-off) % HW, axis=1)
        mask = row_ok[dy]
        cm = col_ok[dx]
        if mask is None:
            mask = cm
        elif cm is not None:
            mask = jnp.logical_and(mask, cm)
        return v if mask is None else jnp.where(mask, v, jnp.zeros_like(v))

    # Offset-major order matches the (C, 9C) weight layout built in the wrapper.
    views = [shifted(dy, dx) for dy in (-1, 0, 1) for dx in (-1, 0, 1)]

    ws = ws_ref[...]                     # (C, 9C) cd
    wft = wft_ref[...]                   # (C, C)  cd
    wfb = wfb_ref[...]                   # (C, C)  cd
    bs = bs_ref[...]                     # (C, 1)  f32
    bf = bf_ref[...]                     # (C, 1)  f32
    cw = cw_ref[...]                     # (TB, 1, C) f32

    for b in range(TB):                  # static unroll over the batch tile
        lo, hi = b * C, (b + 1) * C
        x_b = x2[lo:hi]                                                 # (C, HW) cd

        # Spatial attention: 3x3 conv as ONE fused im2col matmul per image.
        patches = jnp.concatenate([v[lo:hi] for v in views], axis=0)    # (9C, HW)
        sw = jax.nn.sigmoid(
            jnp.dot(ws, patches, preferred_element_type=f32) + bs)      # (C, HW) f32
        x_sp = (x_b * sw).astype(cd)

        # Channel attention folded into the x_channel half of the 1x1 weight:
        #   wf_top @ (x * cw)  ==  (wf_top * cw[None, :]) @ x
        wft_b = (wft * cw[b]).astype(cd)                                # (C, C)

        out_b = (jnp.dot(wft_b, x_b, preferred_element_type=f32)
                 + jnp.dot(wfb, x_sp, preferred_element_type=f32)
                 + bf)                                                  # (C, HW) f32
        o_ref[b] = out_b.astype(o_ref.dtype)


@functools.partial(jax.jit, static_argnames=("compute_dtype", "out_dtype"))
def shuffle_attention(x_nchw, wc_oi, bc, ws_oihw, bs, wf_oi, bf, *,
                      compute_dtype=jnp.float32, out_dtype=jnp.float32):
    """x_nchw: (B, C, H, W); params in PyTorch Conv2d layouts.  Returns NCHW."""
    B, C, H, W = x_nchw.shape
    HW = H * W
    f32 = jnp.float32
    cd = compute_dtype

    # Channel attention (global avg-pool -> 1x1 conv -> sigmoid) is only B x C
    # numbers; compute it in f32 outside the kernel.
    mean = jnp.mean(x_nchw.astype(f32), axis=(2, 3))                       # (B, C)
    cw = jax.nn.sigmoid(mean @ wc_oi.astype(f32).T + bc.astype(f32))       # (B, C)
    cw = cw.reshape(B, 1, C)

    # Weights in kernel layouts.
    ws_k = (jnp.transpose(ws_oihw, (0, 2, 3, 1))         # (O, ky, kx, I)
            .reshape(C, 9 * C).astype(cd))               # offset-major, in-minor
    wft_k = wf_oi[:, :C].astype(cd)                      # x_channel half
    wfb_k = wf_oi[:, C:].astype(cd)                      # x_spatial half
    bs_k = bs.reshape(C, 1).astype(f32)
    bf_k = bf.reshape(C, 1).astype(f32)

    # NCHW -> (B, C, HW) is a contiguous (free) reshape; no transposes needed.
    x3 = x_nchw.reshape(B, C, HW).astype(cd)

    vmem_limit = _vmem_limit_bytes()
    tb = _pick_batch_tile(B, C, HW, jnp.dtype(cd).itemsize, vmem_limit // 2)

    out3 = pl.pallas_call(
        functools.partial(shuffle_attn_kernel, H=H, W=W),
        out_shape=jax.ShapeDtypeStruct((B, C, HW), out_dtype),
        grid=(B // tb,),
        in_specs=[
            pl.BlockSpec((tb, C, HW), lambda b: (b, 0, 0)),
            pl.BlockSpec((tb, 1, C), lambda b: (b, 0, 0)),
            pl.BlockSpec((C, 9 * C), lambda b: (0, 0)),
            pl.BlockSpec((C, 1), lambda b: (0, 0)),
            pl.BlockSpec((C, C), lambda b: (0, 0)),
            pl.BlockSpec((C, C), lambda b: (0, 0)),
            pl.BlockSpec((C, 1), lambda b: (0, 0)),
        ],
        out_specs=pl.BlockSpec((tb, C, HW), lambda b: (b, 0, 0)),
        compiler_params=pltpu.CompilerParams(
            dimension_semantics=("parallel",),
            vmem_limit_bytes=vmem_limit,
        ),
    )(x3, cw, ws_k, bs_k, wft_k, wfb_k, bf_k)

    # (B, C, HW) -> (B, C, H, W) is a layout-preserving (free) reshape.
    return out3.reshape(B, C, H, W)


def reference_jax(x, wc_oi, bc, ws_oihw, bs, wf_oi, bf):
    """Plain-JAX reference mirroring PyTorch NCHW semantics."""
    mean = jnp.mean(x, axis=(2, 3))                                    # (B, C)
    cw = jax.nn.sigmoid(jnp.einsum('bi,oi->bo', mean, wc_oi) + bc)
    x_channel = x * cw[:, :, None, None]
    sw = jax.lax.conv_general_dilated(
        x, ws_oihw, (1, 1), 'SAME',
        dimension_numbers=('NCHW', 'OIHW', 'NCHW')) + bs[None, :, None, None]
    x_spatial = x * jax.nn.sigmoid(sw)
    cat = jnp.concatenate([x_channel, x_spatial], axis=1)
    out = jax.lax.conv_general_dilated(
        cat, wf_oi[:, :, None, None], (1, 1), 'SAME',
        dimension_numbers=('NCHW', 'OIHW', 'NCHW')) + bf[None, :, None, None]
    return out


if __name__ == "__main__":
    B, C, H, W = 2, 32, 16, 16

    key = jax.random.PRNGKey(0)
    k_x, k_wc, k_bc, k_ws, k_bs, k_wf, k_bf = jax.random.split(key, 7)

    x = jax.random.normal(k_x, (B, C, H, W), jnp.float32)

    # PyTorch-layout parameters (deterministic synthetic init).
    wc_oi = 0.1 * jax.random.normal(k_wc, (C, C), jnp.float32)          # Conv2d(C,C,1)
    bc = 0.1 * jax.random.normal(k_bc, (C,), jnp.float32)
    ws_oihw = 0.1 * jax.random.normal(k_ws, (C, C, 3, 3), jnp.float32)  # Conv2d(C,C,3)
    bs = 0.1 * jax.random.normal(k_bs, (C,), jnp.float32)
    wf_oi = 0.1 * jax.random.normal(k_wf, (C, 2 * C), jnp.float32)      # Conv2d(2C,C,1)
    bf = 0.1 * jax.random.normal(k_bf, (C,), jnp.float32)

    ref = jax.block_until_ready(
        reference_jax(x, wc_oi, bc, ws_oihw, bs, wf_oi, bf))

    # Full-precision path: must match the reference tightly.
    out_f32 = jax.block_until_ready(
        shuffle_attention(x, wc_oi, bc, ws_oihw, bs, wf_oi, bf,
                          compute_dtype=jnp.float32))
    assert out_f32.shape == (B, C, H, W)
    err_f32 = float(jnp.max(jnp.abs(out_f32 - ref)))
    assert jnp.allclose(out_f32, ref, atol=2e-4, rtol=2e-4), err_f32

    # bf16-operand path (v6e/v7x bandwidth win): bf16 streaming / patches /
    # matmul operands, f32 accumulation; loose tolerance for bf16 rounding.
    out_bf16 = jax.block_until_ready(
        shuffle_attention(x, wc_oi, bc, ws_oihw, bs, wf_oi, bf,
                          compute_dtype=jnp.bfloat16))
    err_bf16 = float(jnp.max(jnp.abs(out_bf16 - ref)))
    assert jnp.allclose(out_bf16, ref, atol=1e-1, rtol=1e-1), err_bf16

    print("KERNEL_OK")
</pallas_src>

<mosaic_0001>
module attributes {stable_mosaic.version = 11 : i64} {
  func.func @shuffle_attn_kernel(%arg0: i32, %arg1: memref<2x32x256xf32, #tpu.memory_space<vmem>>, %arg2: memref<2x1x32xf32, #tpu.memory_space<vmem>>, %arg3: memref<32x288xf32, #tpu.memory_space<vmem>>, %arg4: memref<32x1xf32, #tpu.memory_space<vmem>>, %arg5: memref<32x32xf32, #tpu.memory_space<vmem>>, %arg6: memref<32x32xf32, #tpu.memory_space<vmem>>, %arg7: memref<32x1xf32, #tpu.memory_space<vmem>>, %arg8: memref<2x32x256xf32, #tpu.memory_space<vmem>>) attributes {dimension_semantics = [#tpu.dimension_semantics<parallel>], iteration_bounds = array<i64: 1>, scalar_prefetch = 0 : i64, scratch_operands = 0 : i64, tpu.core_type = #tpu.core_type<tc>, window_params = [{transform_indices = @transform_0, window_bounds = array<i64: 2, 32, 256>}, {transform_indices = @transform_1, window_bounds = array<i64: 2, 1, 32>}, {pipeline_mode = #tpu.pipeline_mode<synchronous>, transform_indices = @transform_2, window_bounds = array<i64: 32, 288>}, {pipeline_mode = #tpu.pipeline_mode<synchronous>, transform_indices = @transform_3, window_bounds = array<i64: 32, 1>}, {pipeline_mode = #tpu.pipeline_mode<synchronous>, transform_indices = @transform_4, window_bounds = array<i64: 32, 32>}, {pipeline_mode = #tpu.pipeline_mode<synchronous>, transform_indices = @transform_5, window_bounds = array<i64: 32, 32>}, {pipeline_mode = #tpu.pipeline_mode<synchronous>, transform_indices = @transform_6, window_bounds = array<i64: 32, 1>}, {transform_indices = @transform_7, window_bounds = array<i64: 2, 32, 256>}]} {
    %c0 = arith.constant 0 : index
    %c0_0 = arith.constant 0 : index
    %c0_1 = arith.constant 0 : index
    %0 = vector.load %arg1[%c0, %c0_0, %c0_1] : memref<2x32x256xf32, #tpu.memory_space<vmem>>, vector<2x32x256xf32>
    %1 = vector.shape_cast %0 : vector<2x32x256xf32> to vector<64x256xf32>
    %2 = tpu.iota {dimensions = array<i32: 1>} : vector<1x256xi32>
    %c16_i32 = arith.constant 16 : i32
    %c0_i32 = arith.constant 0 : i32
    %3 = arith.cmpi eq, %c16_i32, %c0_i32 : i32
    %c1_i32 = arith.constant 1 : i32
    %4 = arith.select %3, %c1_i32, %c16_i32 : i32
    %5 = vector.broadcast %4 : i32 to vector<1x256xi32>
    %6 = arith.remsi %2, %5 : vector<1x256xi32>
    %c0_i32_2 = arith.constant 0 : i32
    %7 = vector.broadcast %c0_i32_2 : i32 to vector<1x256xi32>
    %8 = arith.cmpi ne, %6, %7 : vector<1x256xi32>
    %c0_i32_3 = arith.constant 0 : i32
    %9 = vector.broadcast %c0_i32_3 : i32 to vector<1x256xi32>
    %10 = arith.cmpi slt, %6, %9 : vector<1x256xi32>
    %c0_i32_4 = arith.constant 0 : i32
    %11 = arith.cmpi slt, %4, %c0_i32_4 : i32
    %12 = vector.broadcast %11 : i1 to vector<1x256xi1>
    %13 = vector.broadcast %12 : vector<1x256xi1> to vector<1x256xi1>
    %14 = arith.xori %10, %13 : vector<1x256xi1>
    %15 = arith.andi %14, %8 : vector<1x256xi1>
    %16 = vector.broadcast %4 : i32 to vector<1x256xi32>
    %17 = arith.addi %6, %16 : vector<1x256xi32>
    %18 = arith.select %15, %17, %6 : vector<1x256xi1>, vector<1x256xi32>
    %c16_i32_5 = arith.constant 16 : i32
    %19 = vector.broadcast %c16_i32_5 : i32 to vector<1x256xi32>
    %20 = arith.cmpi sge, %2, %19 : vector<1x256xi32>
    %c240_i32 = arith.constant 240 : i32
    %21 = vector.broadcast %c240_i32 : i32 to vector<1x256xi32>
    %22 = arith.cmpi slt, %2, %21 : vector<1x256xi32>
    %c1_i32_6 = arith.constant 1 : i32
    %23 = vector.broadcast %c1_i32_6 : i32 to vector<1x256xi32>
    %24 = arith.cmpi sge, %18, %23 : vector<1x256xi32>
    %c14_i32 = arith.constant 14 : i32
    %25 = vector.broadcast %c14_i32 : i32 to vector<1x256xi32>
    %26 = arith.cmpi sle, %18, %25 : vector<1x256xi32>
    %c17_i32 = arith.constant 17 : i32
    %27 = tpu.dynamic_rotate %1 by %c17_i32 dim 1 : vector<64x256xf32>, i32 -> vector<64x256xf32>
    %28 = arith.andi %20, %24 : vector<1x256xi1>
    %cst = arith.constant 0.000000e+00 : f32
    %29 = vector.broadcast %cst : f32 to vector<64x256xf32>
    %30 = vector.shape_cast %28 : vector<1x256xi1> to vector<1x256xi1>
    %31 = vector.broadcast %30 : vector<1x256xi1> to vector<64x256xi1>
    %32 = arith.select %31, %27, %29 : vector<64x256xi1>, vector<64x256xf32>
    %c16_i32_7 = arith.constant 16 : i32
    %33 = tpu.dynamic_rotate %1 by %c16_i32_7 dim 1 : vector<64x256xf32>, i32 -> vector<64x256xf32>
    %cst_8 = arith.constant 0.000000e+00 : f32
    %34 = vector.broadcast %cst_8 : f32 to vector<64x256xf32>
    %35 = vector.shape_cast %20 : vector<1x256xi1> to vector<1x256xi1>
    %36 = vector.broadcast %35 : vector<1x256xi1> to vector<64x256xi1>
    %37 = arith.select %36, %33, %34 : vector<64x256xi1>, vector<64x256xf32>
    %c15_i32 = arith.constant 15 : i32
    %38 = tpu.dynamic_rotate %1 by %c15_i32 dim 1 : vector<64x256xf32>, i32 -> vector<64x256xf32>
    %39 = arith.andi %20, %26 : vector<1x256xi1>
    %cst_9 = arith.constant 0.000000e+00 : f32
    %40 = vector.broadcast %cst_9 : f32 to vector<64x256xf32>
    %41 = vector.shape_cast %39 : vector<1x256xi1> to vector<1x256xi1>
    %42 = vector.broadcast %41 : vector<1x256xi1> to vector<64x256xi1>
    %43 = arith.select %42, %38, %40 : vector<64x256xi1>, vector<64x256xf32>
    %c1_i32_10 = arith.constant 1 : i32
    %44 = tpu.dynamic_rotate %1 by %c1_i32_10 dim 1 : vector<64x256xf32>, i32 -> vector<64x256xf32>
    %cst_11 = arith.constant 0.000000e+00 : f32
    %45 = vector.broadcast %cst_11 : f32 to vector<64x256xf32>
    %46 = vector.shape_cast %24 : vector<1x256xi1> to vector<1x256xi1>
    %47 = vector.broadcast %46 : vector<1x256xi1> to vector<64x256xi1>
    %48 = arith.select %47, %44, %45 : vector<64x256xi1>, vector<64x256xf32>
    %c255_i32 = arith.constant 255 : i32
    %49 = tpu.dynamic_rotate %1 by %c255_i32 dim 1 : vector<64x256xf32>, i32 -> vector<64x256xf32>
    %cst_12 = arith.constant 0.000000e+00 : f32
    %50 = vector.broadcast %cst_12 : f32 to vector<64x256xf32>
    %51 = vector.shape_cast %26 : vector<1x256xi1> to vector<1x256xi1>
    %52 = vector.broadcast %51 : vector<1x256xi1> to vector<64x256xi1>
    %53 = arith.select %52, %49, %50 : vector<64x256xi1>, vector<64x256xf32>
    %c241_i32 = arith.constant 241 : i32
    %54 = tpu.dynamic_rotate %1 by %c241_i32 dim 1 : vector<64x256xf32>, i32 -> vector<64x256xf32>
    %55 = arith.andi %22, %24 : vector<1x256xi1>
    %cst_13 = arith.constant 0.000000e+00 : f32
    %56 = vector.broadcast %cst_13 : f32 to vector<64x256xf32>
    %57 = vector.shape_cast %55 : vector<1x256xi1> to vector<1x256xi1>
    %58 = vector.broadcast %57 : vector<1x256xi1> to vector<64x256xi1>
    %59 = arith.select %58, %54, %56 : vector<64x256xi1>, vector<64x256xf32>
    %c240_i32_14 = arith.constant 240 : i32
    %60 = tpu.dynamic_rotate %1 by %c240_i32_14 dim 1 : vector<64x256xf32>, i32 -> vector<64x256xf32>
    %cst_15 = arith.constant 0.000000e+00 : f32
    %61 = vector.broadcast %cst_15 : f32 to vector<64x256xf32>
    %62 = vector.shape_cast %22 : vector<1x256xi1> to vector<1x256xi1>
    %63 = vector.broadcast %62 : vector<1x256xi1> to vector<64x256xi1>
    %64 = arith.select %63, %60, %61 : vector<64x256xi1>, vector<64x256xf32>
    %c239_i32 = arith.constant 239 : i32
    %65 = tpu.dynamic_rotate %1 by %c239_i32 dim 1 : vector<64x256xf32>, i32 -> vector<64x256xf32>
    %66 = arith.andi %22, %26 : vector<1x256xi1>
    %cst_16 = arith.constant 0.000000e+00 : f32
    %67 = vector.broadcast %cst_16 : f32 to vector<64x256xf32>
    %68 = vector.shape_cast %66 : vector<1x256xi1> to vector<1x256xi1>
    %69 = vector.broadcast %68 : vector<1x256xi1> to vector<64x256xi1>
    %70 = arith.select %69, %65, %67 : vector<64x256xi1>, vector<64x256xf32>
    %c0_17 = arith.constant 0 : index
    %c0_18 = arith.constant 0 : index
    %71 = vector.load %arg3[%c0_17, %c0_18] : memref<32x288xf32, #tpu.memory_space<vmem>>, vector<32x288xf32>
    %c0_19 = arith.constant 0 : index
    %c0_20 = arith.constant 0 : index
    %72 = vector.load %arg5[%c0_19, %c0_20] : memref<32x32xf32, #tpu.memory_space<vmem>>, vector<32x32xf32>
    %c0_21 = arith.constant 0 : index
    %c0_22 = arith.constant 0 : index
    %73 = vector.load %arg6[%c0_21, %c0_22] : memref<32x32xf32, #tpu.memory_space<vmem>>, vector<32x32xf32>
    %c0_23 = arith.constant 0 : index
    %c0_24 = arith.constant 0 : index
    %74 = vector.load %arg4[%c0_23, %c0_24] : memref<32x1xf32, #tpu.memory_space<vmem>>, vector<32x1xf32>
    %c0_25 = arith.constant 0 : index
    %c0_26 = arith.constant 0 : index
    %75 = vector.load %arg7[%c0_25, %c0_26] : memref<32x1xf32, #tpu.memory_space<vmem>>, vector<32x1xf32>
    %c0_27 = arith.constant 0 : index
    %c0_28 = arith.constant 0 : index
    %c0_29 = arith.constant 0 : index
    %76 = vector.load %arg2[%c0_27, %c0_28, %c0_29] : memref<2x1x32xf32, #tpu.memory_space<vmem>>, vector<2x1x32xf32>
    %77 = vector.extract_strided_slice %1 {offsets = [0, 0], sizes = [32, 256], strides = [1, 1]} : vector<64x256xf32> to vector<32x256xf32>
    %78 = vector.extract_strided_slice %32 {offsets = [0, 0], sizes = [32, 256], strides = [1, 1]} : vector<64x256xf32> to vector<32x256xf32>
    %79 = vector.extract_strided_slice %37 {offsets = [0, 0], sizes = [32, 256], strides = [1, 1]} : vector<64x256xf32> to vector<32x256xf32>
    %80 = vector.extract_strided_slice %43 {offsets = [0, 0], sizes = [32, 256], strides = [1, 1]} : vector<64x256xf32> to vector<32x256xf32>
    %81 = vector.extract_strided_slice %48 {offsets = [0, 0], sizes = [32, 256], strides = [1, 1]} : vector<64x256xf32> to vector<32x256xf32>
    %82 = vector.extract_strided_slice %1 {offsets = [0, 0], sizes = [32, 256], strides = [1, 1]} : vector<64x256xf32> to vector<32x256xf32>
    %83 = vector.extract_strided_slice %53 {offsets = [0, 0], sizes = [32, 256], strides = [1, 1]} : vector<64x256xf32> to vector<32x256xf32>
    %84 = vector.extract_strided_slice %59 {offsets = [0, 0], sizes = [32, 256], strides = [1, 1]} : vector<64x256xf32> to vector<32x256xf32>
    %85 = vector.extract_strided_slice %64 {offsets = [0, 0], sizes = [32, 256], strides = [1, 1]} : vector<64x256xf32> to vector<32x256xf32>
    %86 = vector.extract_strided_slice %70 {offsets = [0, 0], sizes = [32, 256], strides = [1, 1]} : vector<64x256xf32> to vector<32x256xf32>
    %87 = tpu.concatenate %78, %79, %80, %81, %82, %83, %84, %85, %86 in 0 : vector<32x256xf32>, vector<32x256xf32>, vector<32x256xf32>, vector<32x256xf32>, vector<32x256xf32>, vector<32x256xf32>, vector<32x256xf32>, vector<32x256xf32>, vector<32x256xf32> -> vector<288x256xf32>
    %cst_30 = arith.constant dense<0.000000e+00> : vector<32x256xf32>
    %88 = tpu.matmul %71, %87, %cst_30 {dimension_numbers = #tpu.dot_dimension_numbers<[1], [0], [0], [1], [0, 0, 1, 1], [], []>} : vector<32x288xf32>, vector<288x256xf32>, vector<32x256xf32> -> vector<32x256xf32>
    %89 = vector.broadcast %74 : vector<32x1xf32> to vector<32x256xf32>
    %90 = arith.addf %88, %89 : vector<32x256xf32>
    %91 = arith.negf %90 : vector<32x256xf32>
    %92 = math.exp %91 : vector<32x256xf32>
    %cst_31 = arith.constant 1.000000e+00 : f32
    %93 = vector.broadcast %cst_31 : f32 to vector<32x256xf32>
    %94 = arith.addf %93, %92 : vector<32x256xf32>
    %95 = arith.divf %93, %94 : vector<32x256xf32>
    %96 = arith.mulf %77, %95 : vector<32x256xf32>
    %97 = vector.extract_strided_slice %76 {offsets = [0, 0, 0], sizes = [1, 1, 32], strides = [1, 1, 1]} : vector<2x1x32xf32> to vector<1x1x32xf32>
    %98 = vector.shape_cast %97 : vector<1x1x32xf32> to vector<1x32xf32>
    %99 = vector.broadcast %98 : vector<1x32xf32> to vector<32x32xf32>
    %100 = arith.mulf %72, %99 : vector<32x32xf32>
    %cst_32 = arith.constant dense<0.000000e+00> : vector<32x256xf32>
    %101 = tpu.matmul %100, %77, %cst_32 {dimension_numbers = #tpu.dot_dimension_numbers<[1], [0], [0], [1], [0, 0, 1, 1], [], []>} : vector<32x32xf32>, vector<32x256xf32>, vector<32x256xf32> -> vector<32x256xf32>
    %cst_33 = arith.constant dense<0.000000e+00> : vector<32x256xf32>
    %102 = tpu.matmul %73, %96, %cst_33 {dimension_numbers = #tpu.dot_dimension_numbers<[1], [0], [0], [1], [0, 0, 1, 1], [], []>} : vector<32x32xf32>, vector<32x256xf32>, vector<32x256xf32> -> vector<32x256xf32>
    %103 = arith.addf %101, %102 : vector<32x256xf32>
    %104 = vector.broadcast %75 : vector<32x1xf32> to vector<32x256xf32>
    %105 = arith.addf %103, %104 : vector<32x256xf32>
    %c0_34 = arith.constant 0 : index
    %c0_35 = arith.constant 0 : index
    %c0_36 = arith.constant 0 : index
    %106 = vector.load %arg8[%c0_34, %c0_35, %c0_36] : memref<2x32x256xf32, #tpu.memory_space<vmem>>, vector<1x32x256xf32>
    %107 = vector.shape_cast %106 : vector<1x32x256xf32> to vector<32x256xf32>
    %108 = vector.shape_cast %105 : vector<32x256xf32> to vector<1x32x256xf32>
    tpu.vector_store %arg8[%c0_34, %c0_35, %c0_36], %108 {strides = array<i32>} : memref<2x32x256xf32, #tpu.memory_space<vmem>>, vector<1x32x256xf32>,
    %109 = vector.extract_strided_slice %1 {offsets = [32, 0], sizes = [32, 256], strides = [1, 1]} : vector<64x256xf32> to vector<32x256xf32>
    %110 = vector.extract_strided_slice %32 {offsets = [32, 0], sizes = [32, 256], strides = [1, 1]} : vector<64x256xf32> to vector<32x256xf32>
    %111 = vector.extract_strided_slice %37 {offsets = [32, 0], sizes = [32, 256], strides = [1, 1]} : vector<64x256xf32> to vector<32x256xf32>
    %112 = vector.extract_strided_slice %43 {offsets = [32, 0], sizes = [32, 256], strides = [1, 1]} : vector<64x256xf32> to vector<32x256xf32>
    %113 = vector.extract_strided_slice %48 {offsets = [32, 0], sizes = [32, 256], strides = [1, 1]} : vector<64x256xf32> to vector<32x256xf32>
    %114 = vector.extract_strided_slice %1 {offsets = [32, 0], sizes = [32, 256], strides = [1, 1]} : vector<64x256xf32> to vector<32x256xf32>
    %115 = vector.extract_strided_slice %53 {offsets = [32, 0], sizes = [32, 256], strides = [1, 1]} : vector<64x256xf32> to vector<32x256xf32>
    %116 = vector.extract_strided_slice %59 {offsets = [32, 0], sizes = [32, 256], strides = [1, 1]} : vector<64x256xf32> to vector<32x256xf32>
    %117 = vector.extract_strided_slice %64 {offsets = [32, 0], sizes = [32, 256], strides = [1, 1]} : vector<64x256xf32> to vector<32x256xf32>
    %118 = vector.extract_strided_slice %70 {offsets = [32, 0], sizes = [32, 256], strides = [1, 1]} : vector<64x256xf32> to vector<32x256xf32>
    %119 = tpu.concatenate %110, %111, %112, %113, %114, %115, %116, %117, %118 in 0 : vector<32x256xf32>, vector<32x256xf32>, vector<32x256xf32>, vector<32x256xf32>, vector<32x256xf32>, vector<32x256xf32>, vector<32x256xf32>, vector<32x256xf32>, vector<32x256xf32> -> vector<288x256xf32>
    %cst_37 = arith.constant dense<0.000000e+00> : vector<32x256xf32>
    %120 = tpu.matmul %71, %119, %cst_37 {dimension_numbers = #tpu.dot_dimension_numbers<[1], [0], [0], [1], [0, 0, 1, 1], [], []>} : vector<32x288xf32>, vector<288x256xf32>, vector<32x256xf32> -> vector<32x256xf32>
    %121 = vector.broadcast %74 : vector<32x1xf32> to vector<32x256xf32>
    %122 = arith.addf %120, %121 : vector<32x256xf32>
    %123 = arith.negf %122 : vector<32x256xf32>
    %124 = math.exp %123 : vector<32x256xf32>
    %cst_38 = arith.constant 1.000000e+00 : f32
    %125 = vector.broadcast %cst_38 : f32 to vector<32x256xf32>
    %126 = arith.addf %125, %124 : vector<32x256xf32>
    %127 = arith.divf %125, %126 : vector<32x256xf32>
    %128 = arith.mulf %109, %127 : vector<32x256xf32>
    %129 = vector.extract_strided_slice %76 {offsets = [1, 0, 0], sizes = [1, 1, 32], strides = [1, 1, 1]} : vector<2x1x32xf32> to vector<1x1x32xf32>
    %130 = vector.shape_cast %129 : vector<1x1x32xf32> to vector<1x32xf32>
    %131 = vector.broadcast %130 : vector<1x32xf32> to vector<32x32xf32>
    %132 = arith.mulf %72, %131 : vector<32x32xf32>
    %cst_39 = arith.constant dense<0.000000e+00> : vector<32x256xf32>
    %133 = tpu.matmul %132, %109, %cst_39 {dimension_numbers = #tpu.dot_dimension_numbers<[1], [0], [0], [1], [0, 0, 1, 1], [], []>} : vector<32x32xf32>, vector<32x256xf32>, vector<32x256xf32> -> vector<32x256xf32>
    %cst_40 = arith.constant dense<0.000000e+00> : vector<32x256xf32>
    %134 = tpu.matmul %73, %128, %cst_40 {dimension_numbers = #tpu.dot_dimension_numbers<[1], [0], [0], [1], [0, 0, 1, 1], [], []>} : vector<32x32xf32>, vector<32x256xf32>, vector<32x256xf32> -> vector<32x256xf32>
    %135 = arith.addf %133, %134 : vector<32x256xf32>
    %136 = vector.broadcast %75 : vector<32x1xf32> to vector<32x256xf32>
    %137 = arith.addf %135, %136 : vector<32x256xf32>
    %c1 = arith.constant 1 : index
    %c0_41 = arith.constant 0 : index
    %c0_42 = arith.constant 0 : index
    %138 = vector.load %arg8[%c1, %c0_41, %c0_42] : memref<2x32x256xf32, #tpu.memory_space<vmem>>, vector<1x32x256xf32>
    %139 = vector.shape_cast %138 : vector<1x32x256xf32> to vector<32x256xf32>
    %140 = vector.shape_cast %137 : vector<32x256xf32> to vector<1x32x256xf32>
    tpu.vector_store %arg8[%c1, %c0_41, %c0_42], %140 {strides = array<i32>} : memref<2x32x256xf32, #tpu.memory_space<vmem>>, vector<1x32x256xf32>,
    return
  }
  func.func @transform_0(%arg0: i32) -> (i32, i32, i32) {
    %c0_i32 = arith.constant 0 : i32
    %c0_i32_0 = arith.constant 0 : i32
    %c0_i32_1 = arith.constant 0 : i32
    return %arg0, %c0_i32, %c0_i32_0 : i32, i32, i32
  }
  func.func @transform_1(%arg0: i32) -> (i32, i32, i32) {
    %c0_i32 = arith.constant 0 : i32
    %c0_i32_0 = arith.constant 0 : i32
    %c0_i32_1 = arith.constant 0 : i32
    return %arg0, %c0_i32, %c0_i32_0 : i32, i32, i32
  }
  func.func @transform_2(%arg0: i32) -> (i32, i32) {
    %c0_i32 = arith.constant 0 : i32
    %c0_i32_0 = arith.constant 0 : i32
    %c0_i32_1 = arith.constant 0 : i32
    return %c0_i32, %c0_i32_0 : i32, i32
  }
  func.func @transform_3(%arg0: i32) -> (i32, i32) {
    %c0_i32 = arith.constant 0 : i32
    %c0_i32_0 = arith.constant 0 : i32
    %c0_i32_1 = arith.constant 0 : i32
    return %c0_i32, %c0_i32_0 : i32, i32
  }
  func.func @transform_4(%arg0: i32) -> (i32, i32) {
    %c0_i32 = arith.constant 0 : i32
    %c0_i32_0 = arith.constant 0 : i32
    %c0_i32_1 = arith.constant 0 : i32
    return %c0_i32, %c0_i32_0 : i32, i32
  }
  func.func @transform_5(%arg0: i32) -> (i32, i32) {
    %c0_i32 = arith.constant 0 : i32
    %c0_i32_0 = arith.constant 0 : i32
    %c0_i32_1 = arith.constant 0 : i32
    return %c0_i32, %c0_i32_0 : i32, i32
  }
  func.func @transform_6(%arg0: i32) -> (i32, i32) {
    %c0_i32 = arith.constant 0 : i32
    %c0_i32_0 = arith.constant 0 : i32
    %c0_i32_1 = arith.constant 0 : i32
    return %c0_i32, %c0_i32_0 : i32, i32
  }
  func.func @transform_7(%arg0: i32) -> (i32, i32, i32) {
    %c0_i32 = arith.constant 0 : i32
    %c0_i32_0 = arith.constant 0 : i32
    %c0_i32_1 = arith.constant 0 : i32
    return %arg0, %c0_i32, %c0_i32_0 : i32, i32, i32
  }
}

</mosaic_0001>

<bundles_post_ra>
// kernel: shuffle_attention.1
= control target key start
LH: loop header
LB: loop body
LE: loop exit
PB: predicated region body
PF: predicated region fallthrough
CT: control target
= control target key end

     0   :  { %s2496_s17 = smov 17   ;;  %s2497_s18 = smov 16   ;;  %v3728_v13 = vmov 0.0   ;;  %v2505_v14 = vmov 0   ;;  %v42_v31 = vlaneseq  ;;  %s3715_s0 = inlined_call_operand.vmem [shape: f32[2,32,256], index: 0, kind: input, shape index: {}]   ;;  %s3716_s2 = inlined_call_operand.vmem [shape: f32[32,288], index: 2, kind: input, shape index: {}]   ;;  %s3717_s3 = inlined_call_operand.vmem [shape: f32[32,1], index: 3, kind: input, shape index: {}]   ;;  %s3718_s6 = inlined_call_operand.vmem [shape: f32[32,1], index: 6, kind: input, shape index: {}]   ;;  %s3719_s5 = inlined_call_operand.vmem [shape: f32[32,32], index: 5, kind: input, shape index: {}]   ;;  %s3720_s1 = inlined_call_operand.vmem [shape: f32[2,1,32], index: 1, kind: input, shape index: {}]   ;;  %s3721_s4 = inlined_call_operand.vmem [shape: f32[32,32], index: 4, kind: input, shape index: {}]   ;;  %s3722_s7 = inlined_call_operand.vmem [shape: f32[2,32,256], index: 7, kind: output, shape index: {}]  }
   0x1   :  { %v2549_v0 = vld [vmem:[%s3715_s0 + $0x20] sm:$0xff]  ;;  %v2554_v1 = vld [vmem:[%s3715_s0 + $0x30] sm:$0xff]  ;;  %v2571_v5 = vld [vmem:[%s3715_s0 + $0x28] sm:$0xff]  ;;  %s2498_s19 = smov 15   ;;  %s2499_s20 = smov 1   ;;  %1020 = vmatprep.mubr.f32.mxu1 %v3728_v13  ;;  %2254 = vset.pattern.permute.xlu1 %v2505_v14 }
   0x2   :  { %v2559_v2 = vld [vmem:[%s3715_s0] sm:$0xff]  ;;  %v2103_v3 = vpack.i.bf16 %v2554_v1, %v2549_v0  ;;  %v2566_v4 = vld [vmem:[%s3715_s0 + $0x10] sm:$0xff]  ;;  %v2576_v6 = vld [vmem:[%s3715_s0 + $0x38] sm:$0xff]  ;;  %s2500_s21 = smov 127   ;;  %s2501_s22 = smov 113   ;;  %2253 = vset.pattern.permute.xlu0 %v2505_v14  ;;  %v2682_v32 = vand.u32 127, %v42_v31 }
   0x3   :  { %v2093_v7 = vpack.i.bf16 %v2566_v4, %v2559_v2  ;;  %v2583_v8 = vld [vmem:[%s3715_s0 + $0x8] sm:$0xff]  ;;  %v2588_v9 = vld [vmem:[%s3715_s0 + $0x18] sm:$0xff]  ;;  %v2108_v10 = vpack.i.bf16 %v2576_v6, %v2571_v5  ;;  %s2502_s23 = smov 112   ;;  %s2503_s24 = smov 111   ;;  %v657_v16 = vld [vmem:[%s3717_s3] sm:$0xff] }
   0x4   :  { %2104 = vrot.lane.b32.xlu1 %v2103_v3, %s2496_s17  ;;  %v2098_v11 = vpack.i.bf16 %v2588_v9, %v2583_v8  ;;  %v638_v12 = vld [vmem:[%s3716_s2 + $0x8] sm:$0xff]  ;;  %v34_v17 = vld [vmem:[%s3715_s0 + $0x40] sm:$0xff]  ;;  %v36_v18 = vld [vmem:[%s3715_s0 + $0x50] sm:$0xff]  ;;  %v2689_v33 = vadd.s32 128, %v2682_v32  ;;  %v49_v34 = vand.u32 15, %v2682_v32  ;;  %vm69_vm0 = vcmp.ge.s32.totalorder %v2682_v32, 16 }
   0x5   :  { %2094 = vrot.lane.b32.xlu0 %v2093_v7, %s2496_s17  ;;  %764 = vmatprep.mubr.f32.mxu0 %v638_v12  ;;  %v658_v15 = vld [vmem:[%s3717_s3 + $0x8] sm:$0xff]  ;;  %v659_v20 = vld [vmem:[%s3717_s3 + $0x10] sm:$0xff]  ;;  %v660_v21 = vld [vmem:[%s3717_s3 + $0x18] sm:$0xff]  ;;  %v2654_v23 = vpack.i.bf16 %v36_v18, %v34_v17  ;;  %vm109_vm2 = vcmp.lt.s32.totalorder %v2682_v32, 17  ;;  %vm180_vm5 = vcmp.lt.s32.totalorder %v2682_v32, 16  ;;  %vm3726_vm8 = vcmp.lt.s32.totalorder %v2682_v32, 15 }
   0x6   :  { %v35_v19 = vld [vmem:[%s3715_s0 + $0x48] sm:$0xff]  ;;  %v37_v22 = vld [vmem:[%s3715_s0 + $0x58] sm:$0xff]  ;;  %v38_v25 = vld [vmem:[%s3715_s0 + $0x60] sm:$0xff]  ;;  %v56_v36 = vand.u32 15, %v2689_v33  ;;  %vm2704_vm1 = vcmp.ge.s32.totalorder %v49_v34, 1  ;;  %vm2803_vm11 = vcmp.le.s32.totalorder %v49_v34, 14 }
   0x7   :  { %v2656_v24 = vpack.i.bf16 %v37_v22, %v35_v19  ;;  %v40_v26 = vld [vmem:[%s3715_s0 + $0x70] sm:$0xff]  ;;  %v39_v27 = vld [vmem:[%s3715_s0 + $0x68] sm:$0xff]  ;;  %v41_v28 = vld [vmem:[%s3715_s0 + $0x78] sm:$0xff]  ;;  %vm3723_vm14 = vcmp.lt.s32.totalorder %v2682_v32, 1 }
   0x8   :  { %2109 = vrot.lane.b32.xlu1 %v2108_v10, %s2496_s17  ;;  %v2674_v29 = vpack.i.bf16 %v40_v26, %v38_v25  ;;  %v2676_v30 = vpack.i.bf16 %v41_v28, %v39_v27  ;;  %vm2711_vm3 = vcmp.ge.s32.totalorder %v56_v36, 1  ;;  %vm126_vm4 = vmand %vm69_vm0, %vm2704_vm1  ;;  %vm2795_vm10 = vcmp.le.s32.totalorder %v56_v36, 14  ;;  %v3443_v54 = vld [vmem:[%s3715_s0 + $0x40] sm:$0xff] }
   0x9   :  { %2099 = vrot.lane.b32.xlu0 %v2098_v11, %s2496_s17  ;;  %vm2735_vm6 = vmpackc.low %vm2711_vm3, %vm2711_vm3 }
   0xa   :  { %vm2743_vm7 = vmpackc.low %vm126_vm4, %vm126_vm4  ;;  %vm3725_vm4 = vcmp.lt.s32.totalorder %v2682_v32, 113 }
   0xb   :  { %vm2787_vm9 = vmpackc.low %vm69_vm0, %vm69_vm0 }
   0xc   :  { %2119 = vrot.lane.b32.xlu1 %v2098_v11, %s2497_s18  ;;  %vm2820_vm12 = vmpackc.low %vm2795_vm10, %vm2795_vm10 }
   0xd   :  { %2114 = vrot.lane.b32.xlu0 %v2093_v7, %s2497_s18  ;;  %vm266_vm13 = vmand %vm69_vm0, %vm2803_vm11 }
   0xe   :  { %vm2845_vm15 = vmpackc.low %vm266_vm13, %vm266_vm13  ;;  %vm72_vm13 = vcmp.lt.s32.totalorder %v2689_v33, 240 }
   0xf   :  { %vm2878_vm0 = vmpackc.low %vm2704_vm1, %vm2704_vm1  ;;  %vm3724_vm1 = vcmp.lt.s32.totalorder %v2682_v32, 127 }
  0x10   :  { %2129 = vrot.lane.b32.xlu1 %v2108_v10, %s2497_s18 }
  0x11   :  { %2124 = vrot.lane.b32.xlu0 %v2103_v3, %s2497_s18 }
  0x14   :  { %2139 = vrot.lane.b32.xlu1 %v2098_v11, %s2498_s19 }
  0x15   :  { %2134 = vrot.lane.b32.xlu0 %v2093_v7, %s2498_s19 }
  0x18   :  { %2149 = vrot.lane.b32.xlu1 %v2108_v10, %s2498_s19 }
  0x19   :  { %2144 = vrot.lane.b32.xlu0 %v2103_v3, %s2498_s19 }
  0x1c   :  { %2159 = vrot.lane.b32.xlu1 %v2098_v11, %s2499_s20 }
  0x1d   :  { %2154 = vrot.lane.b32.xlu0 %v2093_v7, %s2499_s20 }
  0x20   :  { %2169 = vrot.lane.b32.xlu1 %v2108_v10, %s2499_s20 }
  0x21   :  { %2164 = vrot.lane.b32.xlu0 %v2103_v3, %s2499_s20 }
  0x24   :  { %2179 = vrot.lane.b32.xlu1 %v2098_v11, %s2500_s21 }
  0x25   :  { %2174 = vrot.lane.b32.xlu0 %v2093_v7, %s2500_s21 }
  0x28   :  { %2189 = vrot.lane.b32.xlu1 %v2108_v10, %s2500_s21 }
  0x29   :  { %2184 = vrot.lane.b32.xlu0 %v2103_v3, %s2500_s21 }
  0x2c   :  { %2199 = vrot.lane.b32.xlu1 %v2098_v11, %s2501_s22 }
  0x2d   :  { %2194 = vrot.lane.b32.xlu0 %v2093_v7, %s2501_s22 }
  0x30   :  { %2209 = vrot.lane.b32.xlu1 %v2108_v10, %s2501_s22 }
  0x31   :  { %2204 = vrot.lane.b32.xlu0 %v2103_v3, %s2501_s22 }
  0x34   :  { %2219 = vrot.lane.b32.xlu1 %v2098_v11, %s2502_s23 }
  0x35   :  { %2214 = vrot.lane.b32.xlu0 %v2093_v7, %s2502_s23 }
  0x38   :  { %2229 = vrot.lane.b32.xlu1 %v2108_v10, %s2502_s23 }
  0x39   :  { %2224 = vrot.lane.b32.xlu0 %v2103_v3, %s2502_s23 }
  0x3c   :  { %2239 = vrot.lane.b32.xlu1 %v2098_v11, %s2503_s24 }
  0x3d   :  { %2234 = vrot.lane.b32.xlu0 %v2093_v7, %s2503_s24 }
  0x40   :  { %2249 = vrot.lane.b32.xlu1 %v2108_v10, %s2503_s24 }
  0x41   :  { %2244 = vrot.lane.b32.xlu0 %v2103_v3, %s2503_s24 }
  0x44   :  { %674 = vperm.xlu1 %2254, %v658_v15  }
  0x45   :  { %669 = vperm.xlu0 %2253, %v657_v16  }
  0x48   :  { %679 = vperm.xlu1 %2254, %v659_v20  }
  0x49   :  { %684 = vperm.xlu0 %2253, %v660_v21  }
  0x4c   :  { %2256 = vrot.lane.b32.xlu1 %v2654_v23, %s2496_s17 }
  0x4d   :  { %2261 = vrot.lane.b32.xlu0 %v2656_v24, %s2496_s17 }
  0x50   :  { %2266 = vrot.lane.b32.xlu1 %v2674_v29, %s2496_s17 }
  0x51   :  { %2271 = vrot.lane.b32.xlu0 %v2676_v30, %s2496_s17 }
  0x54   :  { %2276 = vrot.lane.b32.xlu1 %v2654_v23, %s2497_s18 }
  0x55   :  { %2281 = vrot.lane.b32.xlu0 %v2656_v24, %s2497_s18 }
  0x58   :  { %2286 = vrot.lane.b32.xlu1 %v2674_v29, %s2497_s18 }
  0x59   :  { %2291 = vrot.lane.b32.xlu0 %v2676_v30, %s2497_s18 }
  0x5c   :  { %2296 = vrot.lane.b32.xlu1 %v2654_v23, %s2498_s19 }
  0x5d   :  { %2301 = vrot.lane.b32.xlu0 %v2656_v24, %s2498_s19 }
  0x60   :  { %2306 = vrot.lane.b32.xlu1 %v2674_v29, %s2498_s19 }
  0x61   :  { %2311 = vrot.lane.b32.xlu0 %v2676_v30, %s2498_s19 }
  0x64   :  { %2316 = vrot.lane.b32.xlu1 %v2654_v23, %s2499_s20 }
  0x65   :  { %2321 = vrot.lane.b32.xlu0 %v2656_v24, %s2499_s20 }
  0x68   :  { %2326 = vrot.lane.b32.xlu1 %v2674_v29, %s2499_s20 }
  0x69   :  { %2331 = vrot.lane.b32.xlu0 %v2676_v30, %s2499_s20 }
  0x6c   :  { %2336 = vrot.lane.b32.xlu1 %v2654_v23, %s2500_s21 }
  0x6d   :  { %2341 = vrot.lane.b32.xlu0 %v2656_v24, %s2500_s21 }
  0x70   :  { %2346 = vrot.lane.b32.xlu1 %v2674_v29, %s2500_s21 }
  0x71   :  { %2351 = vrot.lane.b32.xlu0 %v2676_v30, %s2500_s21 }
  0x74   :  { %2356 = vrot.lane.b32.xlu1 %v2654_v23, %s2501_s22 }
  0x75   :  { %2361 = vrot.lane.b32.xlu0 %v2656_v24, %s2501_s22 }
  0x76   :  { %v2105_v35 = vpop.permute.xlu1 %2104 }
  0x77   :  { %v2095_v37 = vpop.permute.xlu0 %2094  ;;  %v2107_v39 = vunpack.i.h.bf16 %v2105_v35  ;;  %v2106_v40 = vunpack.i.l.bf16 %v2105_v35 }
  0x78   :  { %v2097_v46 = vunpack.i.h.bf16 %v2095_v37  ;;  %v2096_v47 = vunpack.i.l.bf16 %v2095_v37  ;;  %2366 = vrot.lane.b32.xlu1 %v2674_v29, %s2501_s22 }
  0x79   :  { %2371 = vrot.lane.b32.xlu0 %v2676_v30, %s2501_s22 }
  0x7a   :  { %v2110_v41 = vpop.permute.xlu1 %2109 }
  0x7b   :  { %v2112_v43 = vunpack.i.h.bf16 %v2110_v41  ;;  %v2111_v44 = vunpack.i.l.bf16 %v2110_v41  ;;  %v2100_v45 = vpop.permute.xlu0 %2099 }
  0x7c   :  { %v2102_v48 = vunpack.i.h.bf16 %v2100_v45  ;;  %v2101_v49 = vunpack.i.l.bf16 %v2100_v45  ;;  %2376 = vrot.lane.b32.xlu1 %v2654_v23, %s2502_s23 }
  0x7d   :  { %v112_v50 = vsel %vm109_vm2, %v2106_v40, %v2111_v44  ;;  %v113_v51 = vsel %vm109_vm2, %v2107_v39, %v2112_v43  ;;  %v120_v10 = vsel %vm109_vm2, %v2111_v44, %v2106_v40  ;;  %v121_v11 = vsel %vm109_vm2, %v2112_v43, %v2107_v39  ;;  %2381 = vrot.lane.b32.xlu0 %v2656_v24, %s2502_s23 }
  0x7e   :  { %v110_v52 = vsel %vm109_vm2, %v2096_v47, %v2101_v49  ;;  %v111_v53 = vsel %vm109_vm2, %v2097_v46, %v2102_v48  ;;  %v2120_v55 = vpop.permute.xlu1 %2119  ;;  %v118_v57 = vsel %vm109_vm2, %v2101_v49, %v2096_v47  ;;  %v119_v58 = vsel %vm109_vm2, %v2102_v48, %v2097_v46 }
  0x7f   :  { %v1799_v56 = vpack.c.bf16 %v111_v53, %v110_v52  ;;  %v2122_v60 = vunpack.i.h.bf16 %v2120_v55  ;;  %v2115_v61 = vpop.permute.xlu0 %2114  ;;  %v1802_v62 = vpack.c.bf16 %v119_v58, %v118_v57  ;;  %v2121_v63 = vunpack.i.l.bf16 %v2120_v55 }
  0x80   :  { %v2117_v3 = vunpack.i.h.bf16 %v2115_v61  ;;  %v2116_v7 = vunpack.i.l.bf16 %v2115_v61  ;;  %v1805_v12 = vpack.c.bf16 %v113_v51, %v112_v50  ;;  %v1808_v25 = vpack.c.bf16 %v121_v11, %v120_v10  ;;  %2386 = vrot.lane.b32.xlu1 %v2674_v29, %s2502_s23 }
  0x81   :  { %1801 = vmatprep.subr.msk.bf16.mxu0 %vm2735_vm6, %v1799_v56  ;;  %2391 = vrot.lane.b32.xlu0 %v2676_v30, %s2502_s23 }
  0x82   :  { %1804 = vmatpush1.bf16.msk.msra.mxu0 %vm2743_vm7, %v1802_v62  ;;  %v190_v14 = vsel %vm180_vm5, %v2122_v60, %v2117_v3  ;;  %v2130_v15 = vpop.permute.xlu1 %2129  ;;  %v181_v16 = vsel %vm180_vm5, %v2116_v7, %v2121_v63  ;;  %v182_v17 = vsel %vm180_vm5, %v2117_v3, %v2122_v60  ;;  %v189_v18 = vsel %vm180_vm5, %v2121_v63, %v2116_v7 }
  0x83   :  { %1807 = vmatprep.subr.msk.bf16.mxu0 %vm2735_vm6, %v1805_v12  ;;  %v2132_v19 = vunpack.i.h.bf16 %v2130_v15  ;;  %v2131_v20 = vunpack.i.l.bf16 %v2130_v15  ;;  %v2125_v21 = vpop.permute.xlu0 %2124  ;;  %v1811_v22 = vpack.c.bf16 %v182_v17, %v181_v16  ;;  %v1813_v28 = vpack.c.bf16 %v190_v14, %v189_v18 }
  0x84   :  { %v2127_v26 = vunpack.i.h.bf16 %v2125_v21  ;;  %v2126_v27 = vunpack.i.l.bf16 %v2125_v21  ;;  %2396 = vrot.lane.b32.xlu1 %v2654_v23, %s2503_s24 }
  0x85   :  { %2401 = vrot.lane.b32.xlu0 %v2656_v24, %s2503_s24 }
  0x86   :  { %1810 = vmatpush1.bf16.msk.msra.mxu0 %vm2743_vm7, %v1808_v25  ;;  %v192_v31 = vsel %vm180_vm5, %v2132_v19, %v2127_v26  ;;  %v2140_v35 = vpop.permute.xlu1 %2139  ;;  %v183_v37 = vsel %vm180_vm5, %v2126_v27, %v2131_v20  ;;  %v184_v39 = vsel %vm180_vm5, %v2127_v26, %v2132_v19  ;;  %v191_v40 = vsel %vm180_vm5, %v2131_v20, %v2126_v27 }
  0x87   :  { %1812 = vmatprep.subr.bf16.mxu0 %v1811_v22  ;;  %v2142_v43 = vunpack.i.h.bf16 %v2140_v35  ;;  %v2141_v44 = vunpack.i.l.bf16 %v2140_v35  ;;  %v2135_v45 = vpop.permute.xlu0 %2134  ;;  %v1816_v46 = vpack.c.bf16 %v184_v39, %v183_v37  ;;  %v1818_v51 = vpack.c.bf16 %v192_v31, %v191_v40 }
  0x88   :  { %v2137_v47 = vunpack.i.h.bf16 %v2135_v45  ;;  %v2136_v48 = vunpack.i.l.bf16 %v2135_v45  ;;  %2406 = vrot.lane.b32.xlu1 %v2674_v29, %s2503_s24 }
  0x89   :  { %2411 = vrot.lane.b32.xlu0 %v2676_v30, %s2503_s24 }
  0x8a   :  { %1815 = vmatpush1.bf16.msk.msra.mxu0 %vm2787_vm9, %v1813_v28  ;;  %v251_v52 = vsel %vm3726_vm8, %v2137_v47, %v2142_v43  ;;  %v259_v36 = vsel %vm3726_vm8, %v2142_v43, %v2137_v47  ;;  %v250_v53 = vsel %vm3726_vm8, %v2136_v48, %v2141_v44  ;;  %v2150_v55 = vpop.permute.xlu1 %2149  ;;  %v258_v34 = vsel %vm3726_vm8, %v2141_v44, %v2136_v48 }
  0x8b   :  { %v1821_v56 = vpack.c.bf16 %v251_v52, %v250_v53  ;;  %1817 = vmatprep.subr.bf16.mxu0 %v1816_v46  ;;  %v2152_v57 = vunpack.i.h.bf16 %v2150_v55  ;;  %v2151_v58 = vunpack.i.l.bf16 %v2150_v55  ;;  %v2145_v60 = vpop.permute.xlu0 %2144  ;;  %v1824_v3 = vpack.c.bf16 %v259_v36, %v258_v34 }
  0x8c   :  { %v2147_v62 = vunpack.i.h.bf16 %v2145_v60  ;;  %v2146_v63 = vunpack.i.l.bf16 %v2145_v60  ;;  %v2896_v34 = vpack.c.bf16 %v2588_v9, %v2583_v8  ;;  %v2909_v8 = vpack.c.bf16 %v2566_v4, %v2559_v2 }
  0x8d   :  { %v2913_v9 = vpack.c.bf16 %v2576_v6, %v2571_v5 }
  0x8e   :  { %1820 = vmatpush1.bf16.msk.msra.mxu0 %vm2787_vm9, %v1818_v51  ;;  %v253_v7 = vsel %vm3726_vm8, %v2147_v62, %v2152_v57  ;;  %v261_v10 = vsel %vm3726_vm8, %v2152_v57, %v2147_v62  ;;  %v252_v11 = vsel %vm3726_vm8, %v2146_v63, %v2151_v58  ;;  %v2160_v12 = vpop.permute.xlu1 %2159  ;;  %v260_v14 = vsel %vm3726_vm8, %v2151_v58, %v2146_v63  ;;  %vm616_vm8 = vmand %vm72_vm13, %vm2795_vm10 }
  0x8f   :  { %v1827_v15 = vpack.c.bf16 %v253_v7, %v252_v11  ;;  %1823 = vmatprep.subr.msk.bf16.mxu0 %vm2820_vm12, %v1821_v56  ;;  %v2162_v17 = vunpack.i.h.bf16 %v2160_v12  ;;  %v2161_v18 = vunpack.i.l.bf16 %v2160_v12  ;;  %v2155_v19 = vpop.permute.xlu0 %2154  ;;  %v1830_v22 = vpack.c.bf16 %v261_v10, %v260_v14 }
  0x90   :  { %v2157_v20 = vunpack.i.h.bf16 %v2155_v19  ;;  %v2156_v21 = vunpack.i.l.bf16 %v2155_v19 }
  0x92   :  { %1826 = vmatpush1.bf16.msk.msra.mxu0 %vm2845_vm15, %v1824_v3  ;;  %v322_v25 = vsel %vm3723_vm14, %v2157_v20, %v2162_v17  ;;  %v330_v26 = vsel %vm3723_vm14, %v2162_v17, %v2157_v20  ;;  %v321_v27 = vsel %vm3723_vm14, %v2156_v21, %v2161_v18  ;;  %v2170_v28 = vpop.permute.xlu1 %2169  ;;  %v329_v31 = vsel %vm3723_vm14, %v2161_v18, %v2156_v21 }
  0x93   :  { %v1833_v35 = vpack.c.bf16 %v322_v25, %v321_v27  ;;  %1829 = vmatprep.subr.msk.bf16.mxu0 %vm2820_vm12, %v1827_v15  ;;  %v2172_v37 = vunpack.i.h.bf16 %v2170_v28  ;;  %v2171_v39 = vunpack.i.l.bf16 %v2170_v28  ;;  %v2165_v40 = vpop.permute.xlu0 %2164  ;;  %v1836_v45 = vpack.c.bf16 %v330_v26, %v329_v31 }
  0x94   :  { %v2167_v43 = vunpack.i.h.bf16 %v2165_v40  ;;  %v2166_v44 = vunpack.i.l.bf16 %v2165_v40  ;;  %v2931_v17 = vpack.c.bf16 %v2554_v1, %v2549_v0  ;;  %v661_v0 = vld [vmem:[%s3718_s6] sm:$0xff]  ;;  %v662_v1 = vld [vmem:[%s3718_s6 + $0x8] sm:$0xff] }
  0x95   :  { %1148 = vperm.xlu1 %2254, %v661_v0   ;;  %1153 = vperm.xlu0 %2253, %v662_v1  }
  0x96   :  { %1832 = vmatpush1.bf16.msk.msra.mxu0 %vm2845_vm15, %v1830_v22  ;;  %v324_v46 = vsel %vm3723_vm14, %v2167_v43, %v2172_v37  ;;  %v323_v47 = vsel %vm3723_vm14, %v2166_v44, %v2171_v39  ;;  %v2180_v48 = vpop.permute.xlu1 %2179  ;;  %v332_v52 = vsel %vm3723_vm14, %v2172_v37, %v2167_v43  ;;  %v331_v36 = vsel %vm3723_vm14, %v2171_v39, %v2166_v44  ;;  %vm2958_vm14 = vmpackc.low %vm2803_vm11, %vm2803_vm11 }
  0x97   :  { %v1839_v53 = vpack.c.bf16 %v324_v46, %v323_v47  ;;  %1835 = vmatprep.subr.msk.bf16.mxu0 %vm2735_vm6, %v1833_v35  ;;  %v2175_v55 = vpop.permute.xlu0 %2174  ;;  %v1842_v38 = vpack.c.bf16 %v332_v52, %v331_v36  ;;  %v2182_v57 = vunpack.i.h.bf16 %v2180_v48  ;;  %v2181_v58 = vunpack.i.l.bf16 %v2180_v48  ;;  %vm2975_vm11 = vmand %vm72_vm13, %vm2711_vm3  ;;  %v664_v47 = vld [vmem:[%s3718_s6 + $0x18] sm:$0xff] }
  0x98   :  { %v2177_v60 = vunpack.i.h.bf16 %v2175_v55  ;;  %v2176_v62 = vunpack.i.l.bf16 %v2175_v55  ;;  %vm2997_vm3 = vmpackc.low %vm2975_vm11, %vm2975_vm11 }
  0x99   :  { %1163 = vperm.xlu0 %2253, %v664_v47   ;;  %vm3029_vm11 = vmpackc.low %vm72_vm13, %vm72_vm13 }
  0x9a   :  { %1838 = vmatpush1.bf16.msk.msra.mxu0 %vm2878_vm0, %v1836_v45  ;;  %v2190_v56 = vpop.permute.xlu1 %2189  ;;  %v399_v7 = vsel %vm3724_vm1, %v2182_v57, %v2177_v60  ;;  %v398_v10 = vsel %vm3724_vm1, %v2181_v58, %v2176_v62  ;;  %v391_v5 = vsel %vm3724_vm1, %v2177_v60, %v2182_v57  ;;  %v390_v6 = vsel %vm3724_vm1, %v2176_v62, %v2181_v58  ;;  %v663_v45 = vld [vmem:[%s3718_s6 + $0x10] sm:$0xff] }
  0x9b   :  { %1841 = vmatprep.subr.msk.bf16.mxu0 %vm2735_vm6, %v1839_v53  ;;  %v2185_v63 = vpop.permute.xlu0 %2184  ;;  %v2192_v12 = vunpack.i.h.bf16 %v2190_v56  ;;  %v2191_v2 = vunpack.i.l.bf16 %v2190_v56  ;;  %v1853_v15 = vpack.c.bf16 %v399_v7, %v398_v10  ;;  %v1856_v29 = vpack.c.bf16 %v391_v5, %v390_v6  ;;  %1158 = vperm.xlu1 %2254, %v663_v45  }
  0x9c   :  { %v2187_v4 = vunpack.i.h.bf16 %v2185_v63  ;;  %v2186_v14 = vunpack.i.l.bf16 %v2185_v63 }
  0x9e   :  { %1844 = vmatpush1.bf16.msk.msra.mxu0 %vm2878_vm0, %v1842_v38  ;;  %v2200_v3 = vpop.permute.xlu1 %2199  ;;  %v401_v22 = vsel %vm3724_vm1, %v2192_v12, %v2187_v4  ;;  %v400_v25 = vsel %vm3724_vm1, %v2191_v2, %v2186_v14  ;;  %v393_v26 = vsel %vm3724_vm1, %v2187_v4, %v2192_v12  ;;  %v392_v27 = vsel %vm3724_vm1, %v2186_v14, %v2191_v2 }
  0x9f   :  { %1846 = vmatprep.subr.bf16.mxu0 %v2896_v34  ;;  %v2195_v11 = vpop.permute.xlu0 %2194  ;;  %v2202_v18 = vunpack.i.h.bf16 %v2200_v3  ;;  %v2201_v19 = vunpack.i.l.bf16 %v2200_v3  ;;  %v1859_v31 = vpack.c.bf16 %v401_v22, %v400_v25  ;;  %v1862_v48 = vpack.c.bf16 %v393_v26, %v392_v27 }
  0xa0   :  { %v2197_v20 = vunpack.i.h.bf16 %v2195_v11  ;;  %v2196_v24 = vunpack.i.l.bf16 %v2195_v11  ;;  %vm3727_vm1 = vcmp.lt.s32.totalorder %v2682_v32, 112 }
  0xa2   :  { %1848 = vmatpush1.bf16.msra.mxu0 %v2909_v8  ;;  %v2210_v23 = vpop.permute.xlu1 %2209  ;;  %v468_v35 = vsel %vm3725_vm4, %v2202_v18, %v2197_v20  ;;  %v467_v37 = vsel %vm3725_vm4, %v2201_v19, %v2196_v24  ;;  %v460_v52 = vsel %vm3725_vm4, %v2197_v20, %v2202_v18  ;;  %v459_v42 = vsel %vm3725_vm4, %v2196_v24, %v2201_v19 }
  0xa3   :  { %1850 = vmatprep.subr.bf16.mxu0 %v2913_v9  ;;  %v2205_v21 = vpop.permute.xlu0 %2204  ;;  %v2212_v40 = vunpack.i.h.bf16 %v2210_v23  ;;  %v2211_v43 = vunpack.i.l.bf16 %v2210_v23  ;;  %v1865_v36 = vpack.c.bf16 %v468_v35, %v467_v37  ;;  %v1868_v3 = vpack.c.bf16 %v460_v52, %v459_v42 }
  0xa4   :  { %v2207_v50 = vunpack.i.h.bf16 %v2205_v21  ;;  %v2206_v44 = vunpack.i.l.bf16 %v2205_v21 }
  0xa6   :  { %1852 = vmatpush1.bf16.msra.mxu0 %v2931_v17  ;;  %v2220_v30 = vpop.permute.xlu1 %2219  ;;  %v470_v60 = vsel %vm3725_vm4, %v2212_v40, %v2207_v50  ;;  %v469_v62 = vsel %vm3725_vm4, %v2211_v43, %v2206_v44  ;;  %v462_v7 = vsel %vm3725_vm4, %v2207_v50, %v2212_v40  ;;  %v461_v10 = vsel %vm3725_vm4, %v2206_v44, %v2211_v43 }
  0xa7   :  { %1855 = vmatprep.subr.msk.bf16.mxu0 %vm2820_vm12, %v1853_v15  ;;  %v2215_v39 = vpop.permute.xlu0 %2214  ;;  %v2222_v53 = vunpack.i.h.bf16 %v2220_v30  ;;  %v2221_v55 = vunpack.i.l.bf16 %v2220_v30  ;;  %v1871_v11 = vpack.c.bf16 %v470_v60, %v469_v62  ;;  %v1874_v18 = vpack.c.bf16 %v462_v7, %v461_v10  ;;  %v3085_v60 = vld [vmem:[%s3716_s2 + $0x18] sm:$0xff]  ;;  %v3101_v7 = vld [vmem:[%s3716_s2 + $0x30] sm:$0xff] }
  0xa8   :  { %v2217_v38 = vunpack.i.h.bf16 %v2215_v39  ;;  %v2216_v56 = vunpack.i.l.bf16 %v2215_v39  ;;  %vm598_vm4 = vcmp.lt.s32.totalorder %v2682_v32, 111  ;;  %v3108_v10 = vld [vmem:[%s3716_s2 + $0x50] sm:$0xff] }
  0xaa   :  { %1858 = vmatpush1.bf16.msk.msra.mxu0 %vm2958_vm14, %v1856_v29  ;;  %v2230_v57 = vpop.permute.xlu1 %2229  ;;  %v539_v12 = vsel %vm3727_vm1, %v2222_v53, %v2217_v38  ;;  %v538_v2 = vsel %vm3727_vm1, %v2221_v55, %v2216_v56  ;;  %v530_v20 = vsel %vm3727_vm1, %v2216_v56, %v2221_v55  ;;  %v531_v24 = vsel %vm3727_vm1, %v2217_v38, %v2222_v53  ;;  %v3067_v55 = vld [vmem:[%s3716_s2] sm:$0xff] }
  0xab   :  { %1861 = vmatprep.subr.msk.bf16.mxu0 %vm2820_vm12, %v1859_v31  ;;  %v2225_v58 = vpop.permute.xlu0 %2224  ;;  %v2232_v5 = vunpack.i.h.bf16 %v2230_v57  ;;  %v2231_v6 = vunpack.i.l.bf16 %v2230_v57  ;;  %v1877_v19 = vpack.c.bf16 %v539_v12, %v538_v2  ;;  %v1880_v31 = vpack.c.bf16 %v531_v24, %v530_v20  ;;  %v3072_v38 = vld [vmem:[%s3716_s2 + $0x20] sm:$0xff]  ;;  %v3122_v12 = vld [vmem:[%s3716_s2 + $0x10] sm:$0xff]  ;;  %v3130_v2 = vld [vmem:[%s3716_s2 + $0x28] sm:$0xff] }
  0xac   :  { %v2227_v15 = vunpack.i.h.bf16 %v2225_v58  ;;  %v2226_v23 = vunpack.i.l.bf16 %v2225_v58 }
  0xae   :  { %1864 = vmatpush1.bf16.msk.msra.mxu0 %vm2958_vm14, %v1862_v48  ;;  %v2240_v4 = vpop.permute.xlu1 %2239  ;;  %v541_v1 = vsel %vm3727_vm1, %v2232_v5, %v2227_v15  ;;  %v540_v29 = vsel %vm3727_vm1, %v2231_v6, %v2226_v23  ;;  %v532_v35 = vsel %vm3727_vm1, %v2226_v23, %v2231_v6  ;;  %v533_v43 = vsel %vm3727_vm1, %v2227_v15, %v2232_v5  ;;  %vm3056_vm1 = vmpackc.low %vm616_vm8, %vm616_vm8 }
  0xaf   :  { %1867 = vmatprep.subr.msk.bf16.mxu0 %vm2997_vm3, %v1865_v36  ;;  %v2235_v14 = vpop.permute.xlu0 %2234  ;;  %v2242_v21 = vunpack.i.h.bf16 %v2240_v4  ;;  %v2241_v22 = vunpack.i.l.bf16 %v2240_v4  ;;  %v1882_v37 = vpack.c.bf16 %v541_v1, %v540_v29  ;;  %v1885_v47 = vpack.c.bf16 %v533_v43, %v532_v35  ;;  %v3138_v4 = vld [vmem:[%s3716_s2 + $0x40] sm:$0xff] }
  0xb0   :  { %v2237_v25 = vunpack.i.h.bf16 %v2235_v14  ;;  %v2236_v0 = vunpack.i.l.bf16 %v2235_v14  ;;  %vm687_vm8 = vcmask 261120   ;;  %v3146_v14 = vld [vmem:[%s3716_s2 + $0x58] sm:$0xff] }
  0xb2   :  { %1870 = vmatpush1.bf16.msk.msra.mxu0 %vm2878_vm0, %v1868_v3  ;;  %v2250_v27 = vpop.permute.xlu1 %2249  ;;  %v608_v39 = vsel %vm598_vm4, %v2242_v21, %v2237_v25  ;;  %v607_v40 = vsel %vm598_vm4, %v2241_v22, %v2236_v0  ;;  %v600_v48 = vsel %vm598_vm4, %v2237_v25, %v2242_v21  ;;  %v599_v52 = vsel %vm598_vm4, %v2236_v0, %v2241_v22  ;;  %v3092_v3 = vld [vmem:[%s3716_s2 + $0x38] sm:$0xff] }
  0xb3   :  { %1873 = vmatprep.subr.msk.bf16.mxu0 %vm2997_vm3, %v1871_v11  ;;  %v2245_v30 = vpop.permute.xlu0 %2244  ;;  %v2252_v50 = vunpack.i.h.bf16 %v2250_v27  ;;  %v2251_v44 = vunpack.i.l.bf16 %v2250_v27  ;;  %v1887_v42 = vpack.c.bf16 %v608_v39, %v607_v40  ;;  %v1890_v53 = vpack.c.bf16 %v600_v48, %v599_v52  ;;  %v3115_v11 = vld [vmem:[%s3716_s2 + $0x48] sm:$0xff] }
  0xb4   :  { %v2247_v45 = vunpack.i.h.bf16 %v2245_v30  ;;  %v2246_v46 = vunpack.i.l.bf16 %v2245_v30 }
  0xb6   :  { %1876 = vmatpush1.bf16.msk.msra.mxu0 %vm2878_vm0, %v1874_v18  ;;  %v610_v33 = vsel %vm598_vm4, %v2252_v50, %v2247_v45  ;;  %v609_v49 = vsel %vm598_vm4, %v2251_v44, %v2246_v46  ;;  %v602_v56 = vsel %vm598_vm4, %v2247_v45, %v2252_v50  ;;  %v601_v57 = vsel %vm598_vm4, %v2246_v46, %v2251_v44 }
  0xb7   :  { %1879 = vmatprep.subr.msk.bf16.mxu0 %vm3029_vm11, %v1877_v19  ;;  %v1893_v58 = vpack.c.bf16 %v610_v33, %v609_v49  ;;  %v1896_v62 = vpack.c.bf16 %v602_v56, %v601_v57 }
  0xba   :  { %1881 = vmatpush1.bf16.msra.mxu0 %v1880_v31 }
  0xbb   :  { %1884 = vmatprep.subr.msk.bf16.mxu0 %vm3029_vm11, %v1882_v37 }
  0xbe   :  { %1886 = vmatpush1.bf16.msra.mxu0 %v1885_v47 }
  0xbf   :  { %1889 = vmatprep.subr.msk.bf16.mxu0 %vm3056_vm1, %v1887_v42 }
  0xc1   :  { %765 = vmatmul.mubr.f32.vlgmr.msra.gmra.mrb[0].mxu0 %v3067_v55 }
  0xc2   :  { %770 = vmatprep.mubr.f32.mxu0 %v3072_v38  ;;  %1892 = vmatpush1.bf16.msk.msra.mxu0 %vm2958_vm14, %v1890_v53 }
  0xc3   :  { %1895 = vmatprep.subr.msk.bf16.mxu0 %vm3056_vm1, %v1893_v58  ;;  %v3154_v18 = vpop.permute.xlu1 %674 }
  0xc4   :  { %v3151_v5 = vpop.permute.xlu0 %669 }
  0xc5   :  { %771 = vmatmul.mubr.f32.gmra.mrb[2].mxu0 %v3085_v60 }
  0xc6   :  { %776 = vmatprep.mubr.f32.mxu0 %v3092_v3  ;;  %1898 = vmatpush1.bf16.msk.msra.mxu0 %vm2958_vm14, %v1896_v62 }
  0xc7   :  { %v3159_v29 = vpop.permute.xlu1 %679 }
  0xc8   :  { %v3163_v40 = vpop.permute.xlu0 %684 }
  0xc9   :  { %777 = vmatmul.mubr.f32.gmra.mrb[4].mxu0 %v3101_v7 }
  0xca   :  { %782 = vmatprep.mubr.f32.mxu0 %v3108_v10 }
  0xcd   :  { %783 = vmatmul.mubr.f32.gmra.mrb[6].mxu0 %v3115_v11 }
  0xce   :  { %853 = vmatprep.mubr.f32.mxu0 %v3728_v13 }
  0xd1   :  { %1693 = vmatmul.mubr.msk.f32.vlgmr.msra.gmra.mrb[0].mxu0 %vm687_vm8, %v3122_v12 }
  0xd2   :  { %859 = vmatprep.mubr.f32.mxu0 %v3728_v13 }
  0xd5   :  { %1694 = vmatmul.mubr.msk.f32.gmra.mrb[2].mxu0 %vm687_vm8, %v3130_v2 }
  0xd6   :  { %865 = vmatprep.mubr.f32.mxu0 %v3728_v13 }
  0xd9   :  { %1695 = vmatmul.mubr.msk.f32.gmra.mrb[4].mxu0 %vm687_vm8, %v3138_v4 }
  0xda   :  { %871 = vmatprep.mubr.f32.mxu0 %v3728_v13 }
  0xdd   :  { %1696 = vmatmul.mubr.msk.f32.gmra.mrb[6].mxu0 %vm687_vm8, %v3146_v14 }
  0xde   :  { %1490 = vmatprep.mubr.f32.mxu0 %v3728_v13 }
 0x1a4   :  { %v855_v6 = vpop.f32.mrb[0].mxu0 }
 0x1a5   :  { %v2035_v15 = vadd.f32 %v855_v6, %v3151_v5  ;;  %v857_v23 = vpop.f32.mrb[1].mxu0 }
 0x1a6   :  { %v2036_v19 = vadd.f32 %v857_v23, %v3151_v5 }
 0x1a7   :  { %v1697_v20 = vmul.f32 -1.442695, %v2035_v15 }
 0x1a8   :  { %v1698_v24 = vmul.f32 -1.442695, %v2036_v19  ;;  %v861_v21 = vpop.f32.mrb[2].mxu0 }
 0x1a9   :  { %2415 = vpow2.f32 %v1697_v20  ;;  %v2037_v22 = vadd.f32 %v861_v21, %v3154_v18  ;;  %v863_v25 = vpop.f32.mrb[3].mxu0 }
 0x1aa   :  { %2417 = vpow2.f32 %v1698_v24  ;;  %v2038_v0 = vadd.f32 %v863_v25, %v3154_v18 }
 0x1ab   :  { %v1699_v1 = vmul.f32 -1.442695, %v2037_v22 }
 0x1ac   :  { %v1700_v27 = vmul.f32 -1.442695, %v2038_v0  ;;  %v867_v30 = vpop.f32.mrb[4].mxu0 }
 0x1ad   :  { %2419 = vpow2.f32 %v1699_v1  ;;  %v2039_v31 = vadd.f32 %v867_v30, %v3159_v29  ;;  %v869_v35 = vpop.f32.mrb[5].mxu0  ;;  %v3167_v1 = vpop.permute.xlu1 %2256 }
 0x1ae   :  { %2421 = vpow2.f32 %v1700_v27  ;;  %v2040_v37 = vadd.f32 %v869_v35, %v3159_v29  ;;  %v3169_v27 = vpop.permute.xlu0 %2261 }
 0x1af   :  { %v1701_v39 = vmul.f32 -1.442695, %v2039_v31  ;;  %v2479_v31 = vld [vmem:[%s3715_s0] sm:$0xff] }
 0x1b0   :  { %v1702_v43 = vmul.f32 -1.442695, %v2040_v37  ;;  %v873_v50 = vpop.f32.mrb[6].mxu0  ;;  %v2480_v37 = vld [vmem:[%s3715_s0 + $0x10] sm:$0xff] }
 0x1b1   :  { %2423 = vpow2.f32 %v1701_v39  ;;  %v2041_v44 = vadd.f32 %v873_v50, %v3163_v40  ;;  %v875_v45 = vpop.f32.mrb[7].mxu0 }
 0x1b2   :  { %2425 = vpow2.f32 %v1702_v43  ;;  %v2042_v46 = vadd.f32 %v875_v45, %v3163_v40  ;;  %v2481_v43 = vld [vmem:[%s3715_s0 + $0x8] sm:$0xff] }
 0x1b3   :  { %v2416_v47 = vpop.eup %2415  ;;  %v1703_v48 = vmul.f32 -1.442695, %v2041_v44  ;;  %v2482_v44 = vld [vmem:[%s3715_s0 + $0x18] sm:$0xff] }
 0x1b4   :  { %v2418_v52 = vpop.eup %2417  ;;  %v902_v42 = vadd.f32 1.0, %v2416_v47  ;;  %v1704_v33 = vmul.f32 -1.442695, %v2042_v46 }
 0x1b5   :  { %v903_v49 = vadd.f32 1.0, %v2418_v52  ;;  %2427 = vpow2.f32 %v1703_v48  ;;  %v3183_v52 = vpop.permute.xlu1 %2266 }
 0x1b6   :  { %2429 = vrcp.f32 %v902_v42  ;;  %v3185_v42 = vpop.permute.xlu0 %2271 }
 0x1b7   :  { %v2420_v53 = vpop.eup %2419  ;;  %2431 = vpow2.f32 %v1704_v33 }
 0x1b8   :  { %v2422_v56 = vpop.eup %2421  ;;  %v904_v57 = vadd.f32 1.0, %v2420_v53  ;;  %2433 = vrcp.f32 %v903_v49  ;;  %v2483_v53 = vld [vmem:[%s3715_s0 + $0x20] sm:$0xff] }
 0x1b9   :  { %v905_v58 = vadd.f32 1.0, %v2422_v56 }
 0x1ba   :  { %2435 = vrcp.f32 %v904_v57  ;;  %v2484_v57 = vld [vmem:[%s3715_s0 + $0x30] sm:$0xff] }
 0x1bb   :  { %v2424_v62 = vpop.eup %2423  ;;  %2437 = vrcp.f32 %v905_v58 }
 0x1bc   :  { %v2426_v6 = vpop.eup %2425  ;;  %v906_v15 = vadd.f32 1.0, %v2424_v62 }
 0x1bd   :  { %v907_v19 = vadd.f32 1.0, %v2426_v6 }
 0x1be   :  { %2439 = vrcp.f32 %v906_v15  ;;  %v3193_v15 = vpop.permute.xlu1 %2276 }
 0x1bf   :  { %v2428_v23 = vpop.eup %2427 }
 0x1c0   :  { %v908_v20 = vadd.f32 1.0, %v2428_v23  ;;  %v2430_v24 = vpop.eup %2429  ;;  %v3195_v23 = vpop.permute.xlu0 %2281 }
 0x1c1   :  { %v2432_v21 = vpop.eup %2431  ;;  %v926_v35 = vmul.f32 %v2479_v31, %v2430_v24  ;;  %v2486_v24 = vld [vmem:[%s3715_s0 + $0x38] sm:$0xff]  ;;  %v2263_v31 = vunpack.i.l.bf16 %v3169_v27 }
 0x1c2   :  { %2441 = vrcp.f32 %v908_v20  ;;  %v2434_v22 = vpop.eup %2433  ;;  %v909_v25 = vadd.f32 1.0, %v2432_v21 }
 0x1c3   :  { %2443 = vrcp.f32 %v907_v19  ;;  %v927_v50 = vmul.f32 %v2481_v43, %v2434_v22  ;;  %v2485_v19 = vld [vmem:[%s3715_s0 + $0x28] sm:$0xff] }
 0x1c4   :  { %v2436_v0 = vpop.eup %2435  ;;  %2445 = vrcp.f32 %v909_v25  ;;  %v2259_v25 = vunpack.i.h.bf16 %v3167_v1 }
 0x1c5   :  { %v2438_v30 = vpop.eup %2437  ;;  %v928_v39 = vmul.f32 %v2480_v37, %v2436_v0  ;;  %v2258_v0 = vunpack.i.l.bf16 %v3167_v1  ;;  %v3212_v37 = vpop.permute.xlu1 %2286 }
 0x1c6   :  { %v929_v45 = vmul.f32 %v2482_v44, %v2438_v30  ;;  %v2264_v30 = vunpack.i.h.bf16 %v3169_v27  ;;  %v3227_v27 = vld [vmem:[%s3719_s5 + $0x8] sm:$0xff] }
 0x1c7   :  { %v1901_v46 = vpack.c.bf16 %v928_v39, %v926_v35  ;;  %v3210_v35 = vld [vmem:[%s3719_s5] sm:$0xff]  ;;  %v3214_v39 = vpop.permute.xlu0 %2291  ;;  %v114_v43 = vsel %vm109_vm2, %v2258_v0, %v2263_v31 }
 0x1c8   :  { %v1899_v47 = vpack.c.bf16 %v929_v45, %v927_v50  ;;  %v2440_v48 = vpop.eup %2439  ;;  %v115_v1 = vsel %vm109_vm2, %v2259_v25, %v2264_v30  ;;  %v3241_v45 = vld [vmem:[%s3719_s5 + $0x10] sm:$0xff] }
 0x1c9   :  { %v930_v56 = vmul.f32 %v2483_v53, %v2440_v48  ;;  %v1915_v50 = vpack.c.bf16 %v115_v1, %v114_v43  ;;  %3766 = vst [vmem:[#allocation2_spill] sm:$0xff] %v3241_v45  ;;  %v3261_v48 = vld [vmem:[%s3721_s4] sm:$0xff] }
 0x1ca   :  { %1900 = vmatprep.subr.bf16.mxu1 %v1899_v47  ;;  %v2273_v47 = vunpack.i.l.bf16 %v3185_v42  ;;  %3767 = vst [vmem:[#allocation3_spill] sm:$0xff] %v3261_v48 }
 0x1cb   :  { %1902 = vmatpush1.bf16.msra.mxu1 %v1901_v46  ;;  %v3233_v44 = vpop.permute.xlu0 %2301  ;;  %v2274_v46 = vunpack.i.h.bf16 %v3185_v42  ;;  %v123_v42 = vsel %vm109_vm2, %v2264_v30, %v2259_v25  ;;  %v2289_v25 = vunpack.i.h.bf16 %v3212_v37  ;;  %v2294_v30 = vunpack.i.h.bf16 %v3214_v39 }
 0x1cc   :  { %v2442_v33 = vpop.eup %2441 }
 0x1cd   :  { %v2444_v49 = vpop.eup %2443  ;;  %v932_v58 = vmul.f32 %v2484_v57, %v2442_v33  ;;  %v122_v33 = vsel %vm109_vm2, %v2263_v31, %v2258_v0  ;;  %v2288_v0 = vunpack.i.l.bf16 %v3212_v37  ;;  %v2293_v31 = vunpack.i.l.bf16 %v3214_v39 }
 0x1ce   :  { %v2446_v62 = vpop.eup %2445  ;;  %v931_v20 = vmul.f32 %v2485_v19, %v2444_v49  ;;  %v2283_v19 = vunpack.i.l.bf16 %v3195_v23 }
 0x1cf   :  { %v1905_v6 = vpack.c.bf16 %v932_v58, %v930_v56  ;;  %v933_v21 = vmul.f32 %v2486_v24, %v2446_v62  ;;  %v3278_v57 = vpop.permute.xlu0 %2311  ;;  %v2279_v58 = vunpack.i.h.bf16 %v3193_v15  ;;  %v2278_v62 = vunpack.i.l.bf16 %v3193_v15  ;;  %v3294_v15 = vld [vmem:[%s3721_s4 + $0x8] sm:$0xff] }
 0x1d0   :  { %v1918_v24 = vpack.c.bf16 %v123_v42, %v122_v33  ;;  %3768 = vst [vmem:[#allocation4_spill] sm:$0xff] %v3294_v15  ;;  %v3324_v42 = vld [vmem:[%s3721_s4 + $0x10] sm:$0xff] }
 0x1d1   :  { %v1903_v22 = vpack.c.bf16 %v933_v21, %v931_v20  ;;  %v185_v1 = vsel %vm180_vm5, %v2278_v62, %v2283_v19  ;;  %v193_v39 = vsel %vm180_vm5, %v2283_v19, %v2278_v62  ;;  %3769 = vst [vmem:[#allocation5_spill] sm:$0xff] %v3324_v42  ;;  %v187_v62 = vsel %vm180_vm5, %v2288_v0, %v2293_v31 }
 0x1d3   :  { %1904 = vmatprep.subr.bf16.mxu1 %v1903_v22 }
 0x1d4   :  { %1906 = vmatpush1.bf16.msra.mxu1 %v1905_v6  ;;  %v2284_v6 = vunpack.i.h.bf16 %v3195_v23 }
 0x1d5   :  { %1908 = vmatprep.subr.bf16.mxu1 %v2896_v34  ;;  %v3231_v34 = vpop.permute.xlu1 %2296 }
 0x1d6   :  { %v186_v43 = vsel %vm180_vm5, %v2279_v58, %v2284_v6  ;;  %v2298_v33 = vunpack.i.l.bf16 %v3231_v34 }
 0x1d7   :  { %1706 = vmatmul.mubr.msk.f32.vlgmr.msra.gmra.mrb[0].mxu1 %vm687_vm8, %v3210_v35 }
 0x1d8   :  { %1026 = vmatprep.mubr.f32.mxu1 %v3728_v13  ;;  %1910 = vmatpush1.bf16.msra.mxu1 %v2909_v8  ;;  %v2269_v8 = vunpack.i.h.bf16 %v3183_v52 }
 0x1d9   :  { %1912 = vmatprep.subr.bf16.mxu1 %v2913_v9  ;;  %v2268_v9 = vunpack.i.l.bf16 %v3183_v52  ;;  %v3266_v52 = vld [vmem:[%s3720_s1] ss:$0 sm:$0xff]  ;;  %v3276_v56 = vpop.permute.xlu1 %2306 }
 0x1da   :  { %v117_v49 = vsel %vm109_vm2, %v2269_v8, %v2274_v46  ;;  %v940_v20 = vmul.f32 %v3266_v52, %v3261_v48  ;;  %v125_v21 = vsel %vm109_vm2, %v2274_v46, %v2269_v8  ;;  %v3308_v8 = vpop.permute.xlu0 %2321  ;;  %v194_v46 = vsel %vm180_vm5, %v2284_v6, %v2279_v58 }
 0x1db   :  { %1707 = vmatmul.mubr.msk.f32.gmra.mrb[2].mxu1 %vm687_vm8, %v3227_v27  ;;  %v116_v53 = vsel %vm109_vm2, %v2268_v9, %v2273_v47  ;;  %v124_v23 = vsel %vm109_vm2, %v2273_v47, %v2268_v9  ;;  %v941_v9 = vmul.f32 %v3266_v52, %v3294_v15  ;;  %v2299_v47 = vunpack.i.h.bf16 %v3231_v34 }
 0x1dc   :  { %1032 = vmatprep.mubr.f32.mxu1 %v3728_v13  ;;  %1914 = vmatpush1.bf16.msra.mxu1 %v2931_v17  ;;  %v3256_v17 = vld [vmem:[%s3719_s5 + $0x18] sm:$0xff]  ;;  %v1921_v22 = vpack.c.bf16 %v117_v49, %v116_v53  ;;  %v1924_v37 = vpack.c.bf16 %v125_v21, %v124_v23  ;;  %v2304_v49 = vunpack.i.h.bf16 %v3233_v44  ;;  %v2303_v53 = vunpack.i.l.bf16 %v3233_v44 }
 0x1dd   :  { %1917 = vmatprep.subr.msk.bf16.mxu1 %vm2735_vm6, %v1915_v50  ;;  %v3306_v50 = vpop.permute.xlu1 %2316  ;;  %v1927_v58 = vpack.c.bf16 %v186_v43, %v185_v1  ;;  %v188_v6 = vsel %vm180_vm5, %v2289_v25, %v2294_v30  ;;  %v942_v19 = vmul.f32 %v3266_v52, %v3324_v42  ;;  %v1929_v34 = vpack.c.bf16 %v194_v46, %v193_v39 }
 0x1de   :  { %v195_v44 = vsel %vm180_vm5, %v2293_v31, %v2288_v0  ;;  %vm3771_vm2 = vcmp.lt.s32.totalorder %v2682_v32, 15  ;;  %v1932_v0 = vpack.c.bf16 %v188_v6, %v187_v62  ;;  %v2309_v59 = vunpack.i.h.bf16 %v3276_v56 }
 0x1df   :  { %1708 = vmatmul.mubr.msk.f32.gmra.mrb[4].mxu1 %vm687_vm8, %v3241_v45  ;;  %v255_v21 = vsel %vm3771_vm2, %v2299_v47, %v2304_v49  ;;  %vm3772_vm10 = vmmov %vm3771_vm2  ;;  %v2314_v31 = vunpack.i.h.bf16 %v3278_v57  ;;  %v2313_v1 = vunpack.i.l.bf16 %v3278_v57  ;;  %v2318_v57 = vunpack.i.l.bf16 %v3306_v50 }
 0x1e0   :  { %1038 = vmatprep.mubr.f32.mxu1 %v3728_v13  ;;  %v254_v23 = vsel %vm3772_vm10, %v2298_v33, %v2303_v53  ;;  %vm3775_vm13 = vmmov %vm3771_vm2 }
 0x1e1   :  { %v1937_v39 = vpack.c.bf16 %v255_v21, %v254_v23  ;;  %vm3776_vm10 = vmmov %vm3771_vm2 }
 0x1e3   :  { %1709 = vmatmul.mubr.msk.f32.gmra.mrb[6].mxu1 %vm687_vm8, %v3256_v17 }
 0x1e4   :  { %1121 = vmatprep.mubr.f32.mxu1 %v3728_v13 }
 0x1e7   :  { %1710 = vmatmul.mubr.msk.f32.vlgmr.msra.gmra.mrb[0].mxu1 %vm687_vm8, %v940_v20  ;;  %v196_v20 = vsel %vm180_vm5, %v2294_v30, %v2289_v25  ;;  %v2332_v25 = vpop.permute.xlu0 %2331  ;;  %v2308_v30 = vunpack.i.l.bf16 %v3276_v56  ;;  %vm3773_vm5 = vmmov %vm3771_vm2  ;;  %v2319_v56 = vunpack.i.h.bf16 %v3306_v50  ;;  %v265_v50 = vsel %vm3776_vm10, %v2314_v31, %v2309_v59 }
 0x1e8   :  { %1920 = vmatpush1.bf16.msk.msra.mxu1 %vm2743_vm7, %v1918_v24  ;;  %1127 = vmatprep.mubr.f32.mxu1 %v3728_v13  ;;  %v3348_v24 = vld [vmem:[%s3721_s4 + $0x18] sm:$0xff]  ;;  %v1934_v43 = vpack.c.bf16 %v196_v20, %v195_v44  ;;  %v2334_v21 = vunpack.i.h.bf16 %v2332_v25  ;;  %v2333_v23 = vunpack.i.l.bf16 %v2332_v25 }
 0x1e9   :  { %1923 = vmatprep.subr.msk.bf16.mxu1 %vm2735_vm6, %v1921_v22  ;;  %3770 = vst [vmem:[#allocation6_spill] sm:$0xff] %v3348_v24  ;;  %v2327_v22 = vpop.permute.xlu1 %2326 }
 0x1ea   :  { %v2329_v41 = vunpack.i.h.bf16 %v2327_v22  ;;  %v2328_v44 = vunpack.i.l.bf16 %v2327_v22 }
 0x1eb   :  { %1711 = vmatmul.mubr.msk.f32.gmra.mrb[2].mxu1 %vm687_vm8, %v941_v9  ;;  %v943_v9 = vmul.f32 %v3266_v52, %v3348_v24  ;;  %v2323_v52 = vunpack.i.l.bf16 %v3308_v8 }
 0x1ec   :  { %1926 = vmatpush1.bf16.msk.msra.mxu1 %vm2743_vm7, %v1924_v37  ;;  %1133 = vmatprep.mubr.f32.mxu1 %v3728_v13  ;;  %v263_v37 = vsel %vm3773_vm5, %v2304_v49, %v2299_v47  ;;  %vm3774_vm7 = vmmov %vm3771_vm2  ;;  %v257_v47 = vsel %vm3775_vm13, %v2309_v59, %v2314_v31 }
 0x1ed   :  { %1928 = vmatprep.subr.bf16.mxu1 %v1927_v58  ;;  %v262_v46 = vsel %vm3774_vm7, %v2303_v53, %v2298_v33  ;;  %v2324_v58 = vunpack.i.h.bf16 %v3308_v8  ;;  %v256_v33 = vsel %vm3771_vm2, %v2308_v30, %v2313_v1  ;;  %v3376_v49 = vpop.permute.xlu1 %2336  ;;  %v3378_v53 = vpop.permute.xlu0 %2341  ;;  %v2487_v8 = vld [vmem:[%s3716_s2 + $0x8] sm:$0xff]  ;;  %vm3777_vm5 = vmmov %vm3771_vm2  ;;  %vm3778_vm7 = vcmp.lt.s32.totalorder %v2682_v32, 1 }
 0x1ee   :  { %v1940_v62 = vpack.c.bf16 %v263_v37, %v262_v46  ;;  %v264_v6 = vsel %vm3777_vm5, %v2313_v1, %v2308_v30  ;;  %vm3779_vm13 = vmmov %vm3778_vm7  ;;  %v2338_v16 = vunpack.i.l.bf16 %v3376_v49 }
 0x1ef   :  { %1712 = vmatmul.mubr.msk.f32.gmra.mrb[4].mxu1 %vm687_vm8, %v942_v19  ;;  %v1943_v19 = vpack.c.bf16 %v257_v47, %v256_v33  ;;  %v325_v20 = vsel %vm3779_vm13, %v2318_v57, %v2323_v52  ;;  %vm3781_vm2 = vmmov %vm3778_vm7  ;;  %v2344_v47 = vunpack.i.h.bf16 %v3378_v53  ;;  %v2343_v33 = vunpack.i.l.bf16 %v3378_v53  ;;  %v3448_v53 = vld [vmem:[%s3715_s0 + $0x50] sm:$0xff] }
 0x1f0   :  { %1931 = vmatpush1.bf16.msk.msra.mxu1 %vm2787_vm9, %v1929_v34  ;;  %1139 = vmatprep.mubr.f32.mxu1 %v3728_v13  ;;  %v326_v34 = vsel %vm3778_vm7, %v2319_v56, %v2324_v58  ;;  %v333_v30 = vsel %vm3781_vm2, %v2323_v52, %v2318_v57  ;;  %vm3782_vm10 = vmmov %vm3781_vm2  ;;  %v2339_v52 = vunpack.i.h.bf16 %v3376_v49 }
 0x1f1   :  { %1933 = vmatprep.subr.bf16.mxu1 %v1932_v0  ;;  %v1946_v0 = vpack.c.bf16 %v265_v50, %v264_v6  ;;  %v1949_v31 = vpack.c.bf16 %v326_v34, %v325_v20  ;;  %v2347_v1 = vpop.permute.xlu1 %2346  ;;  %v328_v22 = vsel %vm3782_vm10, %v2329_v41, %v2334_v21  ;;  %vm3783_vm5 = vmmov %vm3781_vm2  ;;  %v3432_v50 = vld [vmem:[%s3715_s0 + $0x58] sm:$0xff] }
 0x1f2   :  { %v327_v25 = vsel %vm3783_vm5, %v2328_v44, %v2333_v23  ;;  %vm3785_vm13 = vmmov %vm3781_vm2 }
 0x1f3   :  { %1713 = vmatmul.mubr.msk.f32.gmra.mrb[6].mxu1 %vm687_vm8, %v943_v9  ;;  %v335_v46 = vsel %vm3785_vm13, %v2333_v23, %v2328_v44  ;;  %v3467_v44 = vld [vmem:[%s3715_s0 + $0x78] sm:$0xff]  ;;  %v2349_v23 = vunpack.i.h.bf16 %v2347_v1 }
 0x1f4   :  { %1936 = vmatpush1.bf16.msk.msra.mxu1 %vm2787_vm9, %v1934_v43  ;;  %1246 = vmatprep.mubr.f32.mxu1 %v2487_v8  ;;  %vm3780_vm9 = vmmov %vm3778_vm7  ;;  %v2352_v43 = vpop.permute.xlu0 %2351  ;;  %v3452_v8 = vpack.c.bf16 %v3448_v53, %v3443_v54 }
 0x1f5   :  { %1939 = vmatprep.subr.msk.bf16.mxu1 %vm2820_vm12, %v1937_v39  ;;  %v334_v59 = vsel %vm3780_vm9, %v2324_v58, %v2319_v56  ;;  %vm3784_vm7 = vmmov %vm3781_vm2  ;;  %v1955_v39 = vpack.c.bf16 %v328_v22, %v327_v25  ;;  %v2357_v56 = vpop.permute.xlu1 %2356 }
 0x1f6   :  { %v1952_v9 = vpack.c.bf16 %v334_v59, %v333_v30  ;;  %v336_v37 = vsel %vm3784_vm7, %v2334_v21, %v2329_v41  ;;  %v3462_v41 = vld [vmem:[%s3715_s0 + $0x68] sm:$0xff]  ;;  %v2354_v59 = vunpack.i.h.bf16 %v2352_v43  ;;  %v2353_v30 = vunpack.i.l.bf16 %v2352_v43 }
 0x1f7   :  { %v1958_v58 = vpack.c.bf16 %v336_v37, %v335_v46  ;;  %v3471_v21 = vpack.c.bf16 %v3467_v44, %v3462_v41  ;;  %v2359_v37 = vunpack.i.h.bf16 %v2357_v56  ;;  %v2358_v46 = vunpack.i.l.bf16 %v2357_v56 }
 0x1f8   :  { %1942 = vmatpush1.bf16.msk.msra.mxu1 %vm2845_vm15, %v1940_v62  ;;  %v2362_v57 = vpop.permute.xlu0 %2361  ;;  %v3427_v62 = vld [vmem:[%s3715_s0 + $0x48] sm:$0xff] }
 0x1f9   :  { %1945 = vmatprep.subr.msk.bf16.mxu1 %vm2820_vm12, %v1943_v19  ;;  %v3436_v49 = vpack.c.bf16 %v3432_v50, %v3427_v62  ;;  %v2367_v34 = vpop.permute.xlu1 %2366 }
 0x1fa   :  { %v2369_v42 = vunpack.i.h.bf16 %v2367_v34 }
 0x1fc   :  { %1948 = vmatpush1.bf16.msk.msra.mxu1 %vm2845_vm15, %v1946_v0  ;;  %v2372_v20 = vpop.permute.xlu0 %2371  ;;  %v2348_v0 = vunpack.i.l.bf16 %v2347_v1  ;;  %v3486_v1 = vld [vmem:[%s3715_s0 + $0x70] sm:$0xff] }
 0x1fd   :  { %1951 = vmatprep.subr.msk.bf16.mxu1 %vm2735_vm6, %v1949_v31  ;;  %v2373_v15 = vunpack.i.l.bf16 %v2372_v20 }
 0x200   :  { %1954 = vmatpush1.bf16.msk.msra.mxu1 %vm2878_vm0, %v1952_v9  ;;  %v3481_v9 = vld [vmem:[%s3715_s0 + $0x60] sm:$0xff] }
 0x201   :  { %1957 = vmatprep.subr.msk.bf16.mxu1 %vm2735_vm6, %v1955_v39  ;;  %vm3786_vm6 = vcmp.lt.s32.totalorder %v2682_v32, 127  ;;  %v3490_v43 = vpack.c.bf16 %v3486_v1, %v3481_v9  ;;  %v2364_v39 = vunpack.i.h.bf16 %v2362_v57 }
 0x202   :  { %v403_v6 = vsel %vm3786_vm6, %v2344_v47, %v2339_v52  ;;  %vm3787_vm15 = vmmov %vm3786_vm6 }
 0x203   :  { %v402_v19 = vsel %vm3787_vm15, %v2343_v33, %v2338_v16  ;;  %vm3788_vm9 = vmmov %vm3786_vm6  ;;  %3790 = vst [vmem:[#allocation7_spill] sm:$0xff] %v3490_v43 }
 0x204   :  { %1960 = vmatpush1.bf16.msk.msra.mxu1 %vm2878_vm0, %v1958_v58  ;;  %v395_v31 = vsel %vm3788_vm9, %v2339_v52, %v2344_v47  ;;  %vm3789_vm2 = vmmov %vm3786_vm6  ;;  %v1969_v25 = vpack.c.bf16 %v403_v6, %v402_v19  ;;  %v2363_v58 = vunpack.i.l.bf16 %v2362_v57  ;;  %v2377_v47 = vpop.permute.xlu1 %2376  ;;  %vm3795_vm6 = vcmp.lt.s32.totalorder %v2682_v32, 113 }
 0x205   :  { %1962 = vmatprep.subr.bf16.mxu1 %v3436_v49  ;;  %v394_v22 = vsel %vm3789_vm2, %v2338_v16, %v2343_v33  ;;  %vm3791_vm10 = vmmov %vm3789_vm2  ;;  %v2382_v33 = vpop.permute.xlu0 %2381  ;;  %v472_v13 = vsel %vm3795_vm6, %v2364_v39, %v2359_v37 }
 0x206   :  { %v405_v52 = vsel %vm3791_vm10, %v2354_v59, %v2349_v23  ;;  %vm3792_vm5 = vmmov %vm3789_vm2  ;;  %v1972_v6 = vpack.c.bf16 %v395_v31, %v394_v22  ;;  %v2368_v31 = vunpack.i.l.bf16 %v2367_v34  ;;  %v2374_v22 = vunpack.i.h.bf16 %v2372_v20 }
 0x207   :  { %v404_v16 = vsel %vm3792_vm5, %v2353_v30, %v2348_v0  ;;  %vm3793_vm7 = vmmov %vm3789_vm2  ;;  %v2384_v48 = vunpack.i.h.bf16 %v2382_v33  ;;  %v2383_v45 = vunpack.i.l.bf16 %v2382_v33 }
 0x208   :  { %1964 = vmatpush1.bf16.msra.mxu1 %v3452_v8  ;;  %v397_v19 = vsel %vm3793_vm7, %v2349_v23, %v2354_v59  ;;  %vm3794_vm13 = vmmov %vm3789_vm2  ;;  %v1975_v57 = vpack.c.bf16 %v405_v52, %v404_v16  ;;  %v2379_v52 = vunpack.i.h.bf16 %v2377_v47  ;;  %v2378_v16 = vunpack.i.l.bf16 %v2377_v47 }
 0x209   :  { %1966 = vmatprep.subr.bf16.mxu1 %v3471_v21  ;;  %v396_v56 = vsel %vm3794_vm13, %v2348_v0, %v2353_v30  ;;  %vm3796_vm15 = vmmov %vm3795_vm6 }
 0x20a   :  { %v471_v24 = vsel %vm3796_vm15, %v2363_v58, %v2358_v46  ;;  %v1978_v23 = vpack.c.bf16 %v397_v19, %v396_v56  ;;  %vm3797_vm9 = vmmov %vm3795_vm6 }
 0x20b   :  { %v464_v59 = vsel %vm3797_vm9, %v2359_v37, %v2364_v39  ;;  %vm3798_vm2 = vmmov %vm3795_vm6  ;;  %v1981_v30 = vpack.c.bf16 %v472_v13, %v471_v24  ;;  %vm3803_vm6 = vcmp.lt.s32.totalorder %v2682_v32, 112  ;;  %v3811_v32 = vmov 0.0  }
 0x20c   :  { %1968 = vmatpush1.bf16.msra.mxu1 %v3490_v43  ;;  %v463_v0 = vsel %vm3798_vm2, %v2358_v46, %v2363_v58  ;;  %v2392_v43 = vpop.permute.xlu0 %2391  ;;  %vm3799_vm10 = vmmov %vm3798_vm2  ;;  %v543_v61 = vsel %vm3803_vm6, %v2384_v48, %v2379_v52 }
 0x20d   :  { %1971 = vmatprep.subr.msk.bf16.mxu1 %vm2820_vm12, %v1969_v25  ;;  %v2387_v25 = vpop.permute.xlu1 %2386  ;;  %v474_v34 = vsel %vm3799_vm10, %v2374_v22, %v2369_v42  ;;  %vm3800_vm5 = vmmov %vm3798_vm2  ;;  %v1984_v37 = vpack.c.bf16 %v464_v59, %v463_v0  ;;  %v2394_v33 = vunpack.i.h.bf16 %v2392_v43 }
 0x20e   :  { %v473_v20 = vsel %vm3800_vm5, %v2373_v15, %v2368_v31  ;;  %vm3801_vm7 = vmmov %vm3798_vm2  ;;  %v2389_v58 = vunpack.i.h.bf16 %v2387_v25  ;;  %v2388_v47 = vunpack.i.l.bf16 %v2387_v25 }
 0x20f   :  { %v466_v13 = vsel %vm3801_vm7, %v2369_v42, %v2374_v22  ;;  %vm3802_vm13 = vmmov %vm3798_vm2  ;;  %v1987_v46 = vpack.c.bf16 %v474_v34, %v473_v20  ;;  %v2393_v42 = vunpack.i.l.bf16 %v2392_v43 }
 0x210   :  { %1974 = vmatpush1.bf16.msk.msra.mxu1 %vm2958_vm14, %v1972_v6  ;;  %v465_v24 = vsel %vm3802_vm13, %v2368_v31, %v2373_v15  ;;  %v2402_v19 = vpop.permute.xlu0 %2401  ;;  %vm3805_vm15 = vmmov %vm3803_vm6 }
 0x211   :  { %1977 = vmatprep.subr.msk.bf16.mxu1 %vm2820_vm12, %v1975_v57  ;;  %vm3804_vm12 = vmmov %vm3803_vm6  ;;  %v2397_v6 = vpop.permute.xlu1 %2396  ;;  %v1990_v56 = vpack.c.bf16 %v466_v13, %v465_v24  ;;  %v535_v15 = vsel %vm3805_vm15, %v2379_v52, %v2384_v48  ;;  %v2404_v59 = vunpack.i.h.bf16 %v2402_v19  ;;  %v2403_v0 = vunpack.i.l.bf16 %v2402_v19 }
 0x212   :  { %v542_v39 = vsel %vm3804_vm12, %v2383_v45, %v2378_v16  ;;  %vm3806_vm9 = vmmov %vm3803_vm6  ;;  %v2399_v22 = vunpack.i.h.bf16 %v2397_v6 }
 0x213   :  { %v534_v57 = vsel %vm3806_vm9, %v2378_v16, %v2383_v45  ;;  %v1993_v31 = vpack.c.bf16 %v543_v61, %v542_v39  ;;  %vm3807_vm2 = vmmov %vm3803_vm6 }
 0x214   :  { %1980 = vmatpush1.bf16.msk.msra.mxu1 %vm2958_vm14, %v1978_v23  ;;  %v2398_v23 = vunpack.i.l.bf16 %v2397_v6  ;;  %v545_v43 = vsel %vm3807_vm2, %v2394_v33, %v2389_v58  ;;  %vm3808_vm10 = vmmov %vm3807_vm2  ;;  %v612_v63 = vsel %vm598_vm4, %v2404_v59, %v2399_v22  ;;  %v2412_v20 = vpop.permute.xlu0 %2411  ;;  %v604_v61 = vsel %vm598_vm4, %v2399_v22, %v2404_v59 }
 0x215   :  { %1983 = vmatprep.subr.msk.bf16.mxu1 %vm2997_vm3, %v1981_v30  ;;  %v544_v48 = vsel %vm3808_vm10, %v2393_v42, %v2388_v47  ;;  %v1996_v30 = vpack.c.bf16 %v535_v15, %v534_v57  ;;  %vm3809_vm5 = vmmov %vm3807_vm2  ;;  %v2407_v34 = vpop.permute.xlu1 %2406  ;;  %v2414_v24 = vunpack.i.h.bf16 %v2412_v20  ;;  %v2413_v51 = vunpack.i.l.bf16 %v2412_v20 }
 0x216   :  { %v537_v45 = vsel %vm3809_vm5, %v2389_v58, %v2394_v33  ;;  %vm3810_vm7 = vmmov %vm3807_vm2  ;;  %v1998_v16 = vpack.c.bf16 %v545_v43, %v544_v48  ;;  %v611_v25 = vsel %vm598_vm4, %v2403_v0, %v2398_v23  ;;  %v2408_v13 = vunpack.i.l.bf16 %v2407_v34 }
 0x217   :  { %v536_v52 = vsel %vm3810_vm7, %v2388_v47, %v2393_v42  ;;  %v603_v39 = vsel %vm598_vm4, %v2398_v23, %v2403_v0  ;;  %v2003_v58 = vpack.c.bf16 %v612_v63, %v611_v25 }
 0x218   :  { %1986 = vmatpush1.bf16.msk.msra.mxu1 %vm2878_vm0, %v1984_v37  ;;  %v2409_v37 = vunpack.i.h.bf16 %v2407_v34  ;;  %v613_v33 = vsel %vm598_vm4, %v2413_v51, %v2408_v13  ;;  %v2006_v42 = vpack.c.bf16 %v604_v61, %v603_v39  ;;  %v605_v19 = vsel %vm598_vm4, %v2408_v13, %v2413_v51 }
 0x219   :  { %1989 = vmatprep.subr.msk.bf16.mxu1 %vm2997_vm3, %v1987_v46  ;;  %v2001_v46 = vpack.c.bf16 %v537_v45, %v536_v52  ;;  %v3598_v28 = vpop.permute.xlu1 %1148 }
 0x21a   :  { %v614_v47 = vsel %vm598_vm4, %v2414_v24, %v2409_v37  ;;  %v606_v6 = vsel %vm598_vm4, %v2409_v37, %v2414_v24 }
 0x21b   :  { %v2012_v26 = vpack.c.bf16 %v606_v6, %v605_v19 }
 0x21c   :  { %1992 = vmatpush1.bf16.msk.msra.mxu1 %vm2878_vm0, %v1990_v56  ;;  %v2009_v56 = vpack.c.bf16 %v614_v47, %v613_v33 }
 0x21d   :  { %1995 = vmatprep.subr.msk.bf16.mxu1 %vm3029_vm11, %v1993_v31 }
 0x220   :  { %1997 = vmatpush1.bf16.msra.mxu1 %v1996_v30 }
 0x221   :  { %2000 = vmatprep.subr.msk.bf16.mxu1 %vm3029_vm11, %v1998_v16 }
 0x224   :  { %2002 = vmatpush1.bf16.msra.mxu1 %v2001_v46 }
 0x225   :  { %2005 = vmatprep.subr.msk.bf16.mxu1 %vm3056_vm1, %v2003_v58 }
 0x227   :  { %1247 = vmatmul.mubr.f32.vlgmr.msra.gmra.mrb[8].mxu1 %v3067_v55 }
 0x228   :  { %1252 = vmatprep.mubr.f32.mxu1 %v3072_v38  ;;  %2008 = vmatpush1.bf16.msk.msra.mxu1 %vm2958_vm14, %v2006_v42 }
 0x229   :  { %2011 = vmatprep.subr.msk.bf16.mxu1 %vm3056_vm1, %v2009_v56 }
 0x22b   :  { %1253 = vmatmul.mubr.f32.gmra.mrb[10].mxu1 %v3085_v60 }
 0x22c   :  { %1258 = vmatprep.mubr.f32.mxu1 %v3092_v3  ;;  %2014 = vmatpush1.bf16.msk.msra.mxu1 %vm2958_vm14, %v2012_v26  ;;  %v3605_v3 = vpop.permute.xlu0 %1153 }
 0x22f   :  { %1259 = vmatmul.mubr.f32.gmra.mrb[12].mxu1 %v3101_v7 }
 0x230   :  { %1264 = vmatprep.mubr.f32.mxu1 %v3108_v10  ;;  %v3625_v31 = vpop.permute.xlu0 %1163 }
 0x233   :  { %1265 = vmatmul.mubr.f32.gmra.mrb[14].mxu1 %v3115_v11 }
 0x234   :  { %1335 = vmatprep.mubr.f32.mxu1 %v3811_v32 }
 0x237   :  { %1770 = vmatmul.mubr.msk.f32.vlgmr.msra.gmra.mrb[8].mxu1 %vm687_vm8, %v3122_v12 }
 0x238   :  { %1341 = vmatprep.mubr.f32.mxu1 %v3811_v32 }
 0x23b   :  { %1771 = vmatmul.mubr.msk.f32.gmra.mrb[10].mxu1 %vm687_vm8, %v3130_v2  ;;  %v3615_v2 = vpop.permute.xlu1 %1158 }
 0x23c   :  { %1347 = vmatprep.mubr.f32.mxu1 %v3811_v32 }
 0x23f   :  { %1772 = vmatmul.mubr.msk.f32.gmra.mrb[12].mxu1 %vm687_vm8, %v3138_v4 }
 0x240   :  { %1353 = vmatprep.mubr.f32.mxu1 %v3811_v32 }
 0x243   :  { %1773 = vmatmul.mubr.msk.f32.gmra.mrb[14].mxu1 %vm687_vm8, %v3146_v14 }
 0x244   :  { %1508 = vmatprep.mubr.f32.mxu1 %v3811_v32 }
 0x2ba   :  { %v1123_v36 = vpop.f32.mrb[0].mxu1 }
 0x2bb   :  { %v1166_v55 = vadd.f32 %v3598_v28, %v1123_v36  ;;  %v1125_v38 = vpop.f32.mrb[1].mxu1 }
 0x2bc   :  { %v1167_v60 = vadd.f32 %v3598_v28, %v1125_v38 }
 0x2bd   :  { %1174 = vst [vmem:[%s3722_s7] sm:$0xff] %v1166_v55 }
 0x2be   :  { %1175 = vst [vmem:[%s3722_s7 + $0x8] sm:$0xff] %v1167_v60  ;;  %v1129_v7 = vpop.f32.mrb[2].mxu1 }
 0x2bf   :  { %v1168_v10 = vadd.f32 %v3605_v3, %v1129_v7  ;;  %v1131_v11 = vpop.f32.mrb[3].mxu1 }
 0x2c0   :  { %v1169_v12 = vadd.f32 %v3605_v3, %v1131_v11 }
 0x2c1   :  { %1176 = vst [vmem:[%s3722_s7 + $0x10] sm:$0xff] %v1168_v10 }
 0x2c2   :  { %1177 = vst [vmem:[%s3722_s7 + $0x18] sm:$0xff] %v1169_v12  ;;  %v1135_v4 = vpop.f32.mrb[4].mxu1 }
 0x2c3   :  { %v1170_v14 = vadd.f32 %v3615_v2, %v1135_v4  ;;  %v1137_v15 = vpop.f32.mrb[5].mxu1 }
 0x2c4   :  { %v1171_v57 = vadd.f32 %v3615_v2, %v1137_v15 }
 0x2c5   :  { %1178 = vst [vmem:[%s3722_s7 + $0x20] sm:$0xff] %v1170_v14 }
 0x2c6   :  { %1179 = vst [vmem:[%s3722_s7 + $0x28] sm:$0xff] %v1171_v57  ;;  %v1141_v22 = vpop.f32.mrb[6].mxu1 }
 0x2c7   :  { %v1172_v23 = vadd.f32 %v3625_v31, %v1141_v22  ;;  %v1143_v59 = vpop.f32.mrb[7].mxu1 }
 0x2c8   :  { %v1173_v0 = vadd.f32 %v3625_v31, %v1143_v59 }
 0x2c9   :  { %1180 = vst [vmem:[%s3722_s7 + $0x30] sm:$0xff] %v1172_v23 }
 0x2ca   :  { %1181 = vst [vmem:[%s3722_s7 + $0x38] sm:$0xff] %v1173_v0 }
 0x30a   :  { %v1337_v43 = vpop.f32.mrb[8].mxu1 }
 0x30b   :  { %v2043_v48 = vadd.f32 %v1337_v43, %v3151_v5  ;;  %v1339_v30 = vpop.f32.mrb[9].mxu1 }
 0x30c   :  { %v2044_v45 = vadd.f32 %v1339_v30, %v3151_v5 }
 0x30d   :  { %v1774_v52 = vmul.f32 -1.442695, %v2043_v48 }
 0x30e   :  { %v1775_v16 = vmul.f32 -1.442695, %v2044_v45  ;;  %v1343_v63 = vpop.f32.mrb[10].mxu1 }
 0x30f   :  { %2447 = vpow2.f32 %v1774_v52  ;;  %v2045_v25 = vadd.f32 %v1343_v63, %v3154_v18  ;;  %v1345_v34 = vpop.f32.mrb[11].mxu1 }
 0x310   :  { %2449 = vpow2.f32 %v1775_v16  ;;  %v2046_v20 = vadd.f32 %v1345_v34, %v3154_v18 }
 0x311   :  { %v1776_v37 = vmul.f32 -1.442695, %v2045_v25 }
 0x312   :  { %v1777_v13 = vmul.f32 -1.442695, %v2046_v20  ;;  %v1349_v24 = vpop.f32.mrb[12].mxu1 }
 0x313   :  { %2451 = vpow2.f32 %v1776_v37  ;;  %v2047_v51 = vadd.f32 %v1349_v24, %v3159_v29  ;;  %v1351_v46 = vpop.f32.mrb[13].mxu1 }
 0x314   :  { %2453 = vpow2.f32 %v1777_v13  ;;  %v2048_v5 = vadd.f32 %v1351_v46, %v3159_v29 }
 0x315   :  { %v1778_v61 = vmul.f32 -1.442695, %v2047_v51 }
 0x316   :  { %v1779_v39 = vmul.f32 -1.442695, %v2048_v5  ;;  %v1355_v58 = vpop.f32.mrb[14].mxu1 }
 0x317   :  { %2455 = vpow2.f32 %v1778_v61  ;;  %v2049_v47 = vadd.f32 %v1355_v58, %v3163_v40  ;;  %v1357_v33 = vpop.f32.mrb[15].mxu1 }
 0x318   :  { %2457 = vpow2.f32 %v1779_v39  ;;  %v2050_v18 = vadd.f32 %v1357_v33, %v3163_v40 }
 0x319   :  { %v2448_v42 = vpop.eup %2447  ;;  %v1780_v6 = vmul.f32 -1.442695, %v2049_v47 }
 0x31a   :  { %v2450_v19 = vpop.eup %2449  ;;  %v1384_v56 = vadd.f32 1.0, %v2448_v42  ;;  %v1781_v26 = vmul.f32 -1.442695, %v2050_v18 }
 0x31b   :  { %v1385_v36 = vadd.f32 1.0, %v2450_v19  ;;  %2459 = vpow2.f32 %v1780_v6 }
 0x31c   :  { %2461 = vrcp.f32 %v1384_v56 }
 0x31d   :  { %v2452_v55 = vpop.eup %2451  ;;  %2463 = vpow2.f32 %v1781_v26 }
 0x31e   :  { %v2454_v29 = vpop.eup %2453  ;;  %v1386_v38 = vadd.f32 1.0, %v2452_v55  ;;  %2465 = vrcp.f32 %v1385_v36 }
 0x31f   :  { %v1387_v60 = vadd.f32 1.0, %v2454_v29 }
 0x320   :  { %2467 = vrcp.f32 %v1386_v38 }
 0x321   :  { %v2456_v7 = vpop.eup %2455  ;;  %2469 = vrcp.f32 %v1387_v60 }
 0x322   :  { %v2458_v10 = vpop.eup %2457  ;;  %v1388_v11 = vadd.f32 1.0, %v2456_v7 }
 0x323   :  { %v1389_v12 = vadd.f32 1.0, %v2458_v10 }
 0x324   :  { %2471 = vrcp.f32 %v1388_v11 }
 0x325   :  { %v2460_v40 = vpop.eup %2459 }
 0x326   :  { %v1390_v4 = vadd.f32 1.0, %v2460_v40  ;;  %v2462_v14 = vpop.eup %2461 }
 0x327   :  { %v2464_v15 = vpop.eup %2463  ;;  %v1408_v0 = vmul.f32 %v3443_v54, %v2462_v14 }
 0x328   :  { %2473 = vrcp.f32 %v1390_v4  ;;  %v2466_v57 = vpop.eup %2465  ;;  %v1391_v22 = vadd.f32 1.0, %v2464_v15 }
 0x329   :  { %2475 = vrcp.f32 %v1389_v12  ;;  %v1409_v48 = vmul.f32 %v3427_v62, %v2466_v57 }
 0x32a   :  { %v2468_v23 = vpop.eup %2467  ;;  %2477 = vrcp.f32 %v1391_v22 }
 0x32b   :  { %v2470_v59 = vpop.eup %2469  ;;  %v1410_v43 = vmul.f32 %v3448_v53, %v2468_v23 }
 0x32c   :  { %v1411_v30 = vmul.f32 %v3432_v50, %v2470_v59 }
 0x32d   :  { %v2017_v45 = vpack.c.bf16 %v1410_v43, %v1408_v0 }
 0x32e   :  { %v2015_v52 = vpack.c.bf16 %v1411_v30, %v1409_v48  ;;  %v2472_v16 = vpop.eup %2471 }
 0x32f   :  { %v1412_v34 = vmul.f32 %v3481_v9, %v2472_v16 }
 0x330   :  { %2016 = vmatprep.subr.bf16.mxu0 %v2015_v52  ;;  %2031 = vmatprep.subr.bf16.mxu1 %v2015_v52 }
 0x331   :  { %2018 = vmatpush1.bf16.msra.mxu0 %v2017_v45  ;;  %2033 = vmatpush1.bf16.msra.mxu1 %v2017_v45 }
 0x332   :  { %v2474_v63 = vpop.eup %2473 }
 0x333   :  { %v2476_v25 = vpop.eup %2475  ;;  %v1414_v20 = vmul.f32 %v3486_v1, %v2474_v63  ;;  %v3817_v1 = vld [vmem:[#allocation6_spill] sm:$0xff] }
 0x334   :  { %v2478_v54 = vpop.eup %2477  ;;  %v1413_v53 = vmul.f32 %v3462_v41, %v2476_v25  ;;  %v3812_v41 = vld [vmem:[#allocation7_spill] sm:$0xff] }
 0x335   :  { %v2021_v37 = vpack.c.bf16 %v1414_v20, %v1412_v34  ;;  %v1415_v62 = vmul.f32 %v3467_v44, %v2478_v54 }
 0x337   :  { %v2019_v50 = vpack.c.bf16 %v1415_v62, %v1413_v53 }
 0x339   :  { %2020 = vmatprep.subr.bf16.mxu0 %v2019_v50  ;;  %2032 = vmatprep.subr.bf16.mxu1 %v2019_v50 }
 0x33a   :  { %2022 = vmatpush1.bf16.msra.mxu0 %v2021_v37  ;;  %2034 = vmatpush1.bf16.msra.mxu1 %v2021_v37 }
 0x33b   :  { %2024 = vmatprep.subr.bf16.mxu0 %v3436_v49  ;;  %v3813_v49 = vld [vmem:[#allocation2_spill] sm:$0xff] }
 0x33d   :  { %1783 = vmatmul.mubr.msk.f32.vlgmr.msra.gmra.mrb[8].mxu0 %vm687_vm8, %v3210_v35  ;;  %1786 = vmatmul.mubr.msk.f32.vlgmr.msra.gmra.mrb[16].mxu1 %vm687_vm8, %v3256_v17  ;;  %v1782_v35 = vld [vmem:[%s3720_s1 + $0x1] ss:$0 sm:$0xff]  ;;  %v3814_v17 = vld [vmem:[#allocation3_spill] sm:$0xff] }
 0x33e   :  { %1496 = vmatprep.mubr.f32.mxu0 %v3811_v32  ;;  %2026 = vmatpush1.bf16.msra.mxu0 %v3452_v8  ;;  %v1422_v44 = vmul.f32 %v1782_v35, %v3814_v17  ;;  %v3815_v8 = vld [vmem:[#allocation4_spill] sm:$0xff]  ;;  %v1425_v13 = vmul.f32 %v1782_v35, %v3817_v1 }
 0x33f   :  { %2028 = vmatprep.subr.bf16.mxu0 %v3471_v21  ;;  %v1423_v21 = vmul.f32 %v1782_v35, %v3815_v8 }
 0x341   :  { %1784 = vmatmul.mubr.msk.f32.gmra.mrb[10].mxu0 %vm687_vm8, %v3227_v27  ;;  %v3816_v27 = vld [vmem:[#allocation5_spill] sm:$0xff] }
 0x342   :  { %1502 = vmatprep.mubr.f32.mxu0 %v3811_v32  ;;  %2030 = vmatpush1.bf16.msra.mxu0 %v3812_v41  ;;  %v1424_v9 = vmul.f32 %v1782_v35, %v3816_v27 }
 0x345   :  { %1785 = vmatmul.mubr.msk.f32.gmra.mrb[12].mxu0 %vm687_vm8, %v3813_v49 }
 0x346   :  { %1591 = vmatprep.mubr.f32.mxu0 %v3811_v32 }
 0x349   :  { %1787 = vmatmul.mubr.msk.f32.vlgmr.msra.gmra.mrb[8].mxu0 %vm687_vm8, %v1422_v44 }
 0x34a   :  { %1597 = vmatprep.mubr.f32.mxu0 %v3811_v32 }
 0x34d   :  { %1788 = vmatmul.mubr.msk.f32.gmra.mrb[10].mxu0 %vm687_vm8, %v1423_v21 }
 0x34e   :  { %1603 = vmatprep.mubr.f32.mxu0 %v3811_v32 }
 0x351   :  { %1789 = vmatmul.mubr.msk.f32.gmra.mrb[12].mxu0 %vm687_vm8, %v1424_v9 }
 0x352   :  { %1609 = vmatprep.mubr.f32.mxu0 %v3811_v32 }
 0x355   :  { %1790 = vmatmul.mubr.msk.f32.gmra.mrb[14].mxu0 %vm687_vm8, %v1425_v13 }
 0x410   :  { %v1510_v24 = vpop.f32.mrb[16].mxu1 }
 0x411   :  { %v1512_v51 = vpop.f32.mrb[17].mxu1 }
 0x41c   :  { %v1593_v46 = vpop.f32.mrb[8].mxu0 }
 0x41d   :  { %v1616_v5 = vadd.f32 %v1593_v46, %v3598_v28  ;;  %v1595_v61 = vpop.f32.mrb[9].mxu0 }
 0x41e   :  { %v1617_v39 = vadd.f32 %v1595_v61, %v3598_v28 }
 0x41f   :  { %1791 = vst [vmem:[%s3722_s7 + $0x40] sm:$0xff] %v1616_v5 }
 0x420   :  { %1792 = vst [vmem:[%s3722_s7 + $0x48] sm:$0xff] %v1617_v39  ;;  %v1599_v58 = vpop.f32.mrb[10].mxu0 }
 0x421   :  { %v1618_v32 = vadd.f32 %v1599_v58, %v3605_v3  ;;  %v1601_v47 = vpop.f32.mrb[11].mxu0 }
 0x422   :  { %v1619_v33 = vadd.f32 %v1601_v47, %v3605_v3 }
 0x423   :  { %1793 = vst [vmem:[%s3722_s7 + $0x50] sm:$0xff] %v1618_v32 }
 0x424   :  { %1794 = vst [vmem:[%s3722_s7 + $0x58] sm:$0xff] %v1619_v33  ;;  %v1605_v28 = vpop.f32.mrb[12].mxu0 }
 0x425   :  { %v1620_v18 = vadd.f32 %v1605_v28, %v3615_v2  ;;  %v1607_v42 = vpop.f32.mrb[13].mxu0 }
 0x426   :  { %v1621_v6 = vadd.f32 %v1607_v42, %v3615_v2 }
 0x427   :  { %1795 = vst [vmem:[%s3722_s7 + $0x60] sm:$0xff] %v1620_v18 }
 0x428   :  { %1796 = vst [vmem:[%s3722_s7 + $0x68] sm:$0xff] %v1621_v6  ;;  %v1611_v3 = vpop.f32.mrb[14].mxu0 }
 0x429   :  { %v1612_v19 = vadd.f32 %v1611_v3, %v1510_v24  ;;  %v1613_v56 = vpop.f32.mrb[15].mxu0 }
 0x42a   :  { %v1614_v26 = vadd.f32 %v1613_v56, %v1512_v51 }
 0x42b   :  { %v1622_v36 = vadd.f32 %v1612_v19, %v3625_v31 }
 0x42c   :  { %v1623_v55 = vadd.f32 %v1614_v26, %v3625_v31 }
 0x42d   :  { %1797 = vst [vmem:[%s3722_s7 + $0x70] sm:$0xff] %v1622_v36 }
 0x42e   :  { %1798 = vst [vmem:[%s3722_s7 + $0x78] sm:$0xff] %v1623_v55 }

</bundles_post_ra>
